<compile_context>
chip_gen: v6e
topology: v6e:2x2x1
jax: 0.10.0
libtpu: 0.0.40
codegen_flags: <defaults>
</compile_context>

<pallas_src>
import jax
import jax.numpy as jnp
from jax.experimental import pallas as pl
from jax.experimental.pallas import tpu as pltpu  # noqa: F401 (kept for parity)


# ----------------------------------------------------------------------------
# Fused kernel builder: num_layers stacked LSTM layers + linear head.
# Gate order follows PyTorch: [i, f, g, o] stacked along the 4H axis.
# ----------------------------------------------------------------------------
def make_fused_lstm_kernel(num_layers, T, B, H):
    """Kernel ref order:
         x2d (bf16)                             (T*B, D)   flattened seq-major input
         [wih_T (bf16), whh_T (bf16), bias(f32)] * num_layers
                                                (Din,4H), (H,4H), (1,4H)
         head_wT (f32), head_b (f32)            (H, O), (1, O)
         out (f32)                              (T*B, O)
    """

    def kernel(*refs):
        idx = 0
        x_ref = refs[idx]; idx += 1
        layer_refs = []
        for _ in range(num_layers):
            layer_refs.append((refs[idx], refs[idx + 1], refs[idx + 2]))
            idx += 3
        head_w_ref = refs[idx]
        head_b_ref = refs[idx + 1]
        out_ref = refs[idx + 2]

        # Layer input (bf16 for the MXU); layer 0 input comes pre-cast from the wrapper.
        cur = x_ref[...]                                         # (T*B, D_in) bf16
        cur_f32 = None

        for li, (wih_ref, whh_ref, b_ref) in enumerate(layer_refs):
            # Hoisted input projection: one batched bf16 MXU matmul for ALL timesteps
            # (M = T*B) with f32 accumulation, plus the combined bias. No serial dep.
            gates_x = (
                jnp.dot(cur, wih_ref[...], preferred_element_type=jnp.float32)
                + b_ref[...]
            )                                                    # (T*B, 4H) f32

            # Pre-split the per-step rows: independent of h, schedulable ahead of
            # the recurrence instead of sitting on the serial critical path.
            gx_rows = [gates_x[t * B:(t + 1) * B, :] for t in range(T)]

            whh = whh_ref[...]                                   # (H, 4H) bf16, resident
            h = jnp.zeros((B, H), jnp.float32)
            c = jnp.zeros((B, H), jnp.float32)
            hs = []

            # Serial recurrence, fully unrolled at trace time (T small & static).
            for t in range(T):
                gates = gx_rows[t] + jnp.dot(
                    h.astype(jnp.bfloat16), whh,
                    preferred_element_type=jnp.float32)          # (B, 4H) f32

                # Full-width activations: 2 EUP pushes per step instead of 4.
                # sigmoid(x) = 0.5 * tanh(0.5 * x) + 0.5 (exact rewrite).
                sig_all = 0.5 * jnp.tanh(0.5 * gates) + 0.5      # (B, 4H)
                tanh_all = jnp.tanh(gates)                       # (B, 4H)

                # PyTorch gate order [i, f, g, o].
                i = sig_all[:, 0 * H:1 * H]
                f = sig_all[:, 1 * H:2 * H]
                g = tanh_all[:, 2 * H:3 * H]
                o = sig_all[:, 3 * H:4 * H]

                c = f * c + i * g
                h = o * jnp.tanh(c)
                hs.append(h)                                     # stays vreg-resident

            # One concat per layer instead of T masked VMEM stores + a reload.
            cur_f32 = jnp.concatenate(hs, axis=0)                # (T*B, H) f32
            if li + 1 < num_layers:
                cur = cur_f32.astype(jnp.bfloat16)

        # Linear head (f32, off the serial path); single bulk store at the end.
        out_ref[...] = (
            jnp.dot(cur_f32, head_w_ref[...], preferred_element_type=jnp.float32)
            + head_b_ref[...]
        ).astype(out_ref.dtype)

    return kernel


# ----------------------------------------------------------------------------
# Full module forward: one fused pallas_call (no grid, everything VMEM-resident).
# ----------------------------------------------------------------------------
def lstm_model_forward(x, params):
    """x: (T, B, D) with B == 1 (module does x.squeeze(1)). Returns (T, O)."""
    T, B, D = x.shape
    assert B == 1, "module's squeeze(1) implies batch == 1"
    num_layers = len(params["layers"])
    assert num_layers >= 1
    H = params["layers"][0][1].shape[1]          # w_hh: (4H, H)
    O = params["head_w"].shape[0]

    # Wrapper-side layout plumbing: flatten x, pre-transpose every weight, combine
    # the two biases.  Matmul operands go in as bf16 (MXU-native on v5e/v6e/v7x);
    # biases and the head stay f32.
    args = [x.reshape(T * B, D).astype(jnp.bfloat16)]
    for (w_ih, w_hh, b_ih, b_hh) in params["layers"]:
        args.append(jnp.asarray(w_ih, jnp.float32).T.astype(jnp.bfloat16))   # (D_in, 4H)
        args.append(jnp.asarray(w_hh, jnp.float32).T.astype(jnp.bfloat16))   # (H, 4H)
        args.append((b_ih + b_hh).reshape(1, -1).astype(jnp.float32))        # (1, 4H)
    args.append(jnp.asarray(params["head_w"], jnp.float32).T)                # (H, O)
    args.append(params["head_b"].reshape(1, O).astype(jnp.float32))          # (1, O)

    kernel = make_fused_lstm_kernel(num_layers, T, B, H)

    # Single launch: the whole problem (< 100 KB) is resident in VMEM on all gens.
    return pl.pallas_call(
        kernel,
        out_shape=jax.ShapeDtypeStruct((T * B, O), jnp.float32),
    )(*args)


# ----------------------------------------------------------------------------
# Parameter init mirroring PyTorch's uniform(-1/sqrt(H), 1/sqrt(H)).
# ----------------------------------------------------------------------------
def init_params(key, input_size, hidden_size, output_size, num_layers):
    params = {"layers": []}
    k = 1.0 / jnp.sqrt(hidden_size)
    for layer in range(num_layers):
        in_dim = input_size if layer == 0 else hidden_size
        key, k1, k2, k3, k4 = jax.random.split(key, 5)
        w_ih = jax.random.uniform(k1, (4 * hidden_size, in_dim), jnp.float32, -k, k)
        w_hh = jax.random.uniform(k2, (4 * hidden_size, hidden_size), jnp.float32, -k, k)
        b_ih = jax.random.uniform(k3, (4 * hidden_size,), jnp.float32, -k, k)
        b_hh = jax.random.uniform(k4, (4 * hidden_size,), jnp.float32, -k, k)
        params["layers"].append((w_ih, w_hh, b_ih, b_hh))
    kh = 1.0 / jnp.sqrt(hidden_size)
    key, k5, k6 = jax.random.split(key, 3)
    params["head_w"] = jax.random.uniform(k5, (output_size, hidden_size), jnp.float32, -kh, kh)
    params["head_b"] = jax.random.uniform(k6, (output_size,), jnp.float32, -kh, kh)
    return params


# ----------------------------------------------------------------------------
# Pure-JAX f32 reference (lax.scan) for correctness check.
# ----------------------------------------------------------------------------
def reference_forward(x, params):
    h = x
    for (w_ih, w_hh, b_ih, b_hh) in params["layers"]:
        H = w_hh.shape[1]

        def step(carry, x_t):
            h_prev, c_prev = carry
            gates = x_t @ w_ih.T + h_prev @ w_hh.T + b_ih + b_hh
            i = jax.nn.sigmoid(gates[:, 0 * H:1 * H])
            f = jax.nn.sigmoid(gates[:, 1 * H:2 * H])
            g = jnp.tanh(gates[:, 2 * H:3 * H])
            o = jax.nn.sigmoid(gates[:, 3 * H:4 * H])
            c_new = f * c_prev + i * g
            h_new = o * jnp.tanh(c_new)
            return (h_new, c_new), h_new

        B = h.shape[1]
        init = (jnp.zeros((B, H), jnp.float32), jnp.zeros((B, H), jnp.float32))
        _, h = jax.lax.scan(step, init, h)
    h = jnp.squeeze(h, axis=1)
    return h @ params["head_w"].T + params["head_b"]


if __name__ == "__main__":
    # Shapes implied by the module: seq-major input, batch = 1 (because of squeeze(1)).
    seq_len = 8
    batch = 1
    input_size = 16
    hidden_size = 32
    output_size = 8
    num_layers = 2

    key = jax.random.PRNGKey(0)
    key, kx, kp = jax.random.split(key, 3)
    x = jax.random.normal(kx, (seq_len, batch, input_size), jnp.float32)
    params = init_params(kp, input_size, hidden_size, output_size, num_layers)

    out = lstm_model_forward(x, params)
    out = jax.block_until_ready(out)

    ref = reference_forward(x, params)
    assert out.shape == (seq_len, output_size), out.shape
    # bf16 MXU operands (f32 accumulation) => loosen tolerance vs the f32 reference,
    # as flagged in the performance review.
    assert jnp.allclose(out, ref, atol=3e-2, rtol=3e-2), "mismatch vs JAX reference"

    print("KERNEL_OK")
</pallas_src>

<mosaic_0001>
module attributes {stable_mosaic.version = 11 : i64} {
  func.func @kernel(%arg0: memref<8x16xbf16, #tpu.memory_space<vmem>>, %arg1: memref<16x128xbf16, #tpu.memory_space<vmem>>, %arg2: memref<32x128xbf16, #tpu.memory_space<vmem>>, %arg3: memref<1x128xf32, #tpu.memory_space<vmem>>, %arg4: memref<32x128xbf16, #tpu.memory_space<vmem>>, %arg5: memref<32x128xbf16, #tpu.memory_space<vmem>>, %arg6: memref<1x128xf32, #tpu.memory_space<vmem>>, %arg7: memref<32x8xf32, #tpu.memory_space<vmem>>, %arg8: memref<1x8xf32, #tpu.memory_space<vmem>>, %arg9: memref<8x8xf32, #tpu.memory_space<vmem>>) attributes {dimension_semantics = [], scalar_prefetch = 0 : i64, scratch_operands = 0 : i64, tpu.core_type = #tpu.core_type<tc>} {
    %c0 = arith.constant 0 : index
    %c0_0 = arith.constant 0 : index
    %0 = vector.load %arg0[%c0, %c0_0] : memref<8x16xbf16, #tpu.memory_space<vmem>>, vector<8x16xbf16>
    %c0_1 = arith.constant 0 : index
    %c0_2 = arith.constant 0 : index
    %1 = vector.load %arg1[%c0_1, %c0_2] : memref<16x128xbf16, #tpu.memory_space<vmem>>, vector<16x128xbf16>
    %cst = arith.constant dense<0.000000e+00> : vector<8x128xf32>
    %2 = tpu.matmul %0, %1, %cst {dimension_numbers = #tpu.dot_dimension_numbers<[1], [0], [0], [1], [0, 0, 1, 1], [], []>} : vector<8x16xbf16>, vector<16x128xbf16>, vector<8x128xf32> -> vector<8x128xf32>
    %c0_3 = arith.constant 0 : index
    %c0_4 = arith.constant 0 : index
    %3 = vector.load %arg3[%c0_3, %c0_4] : memref<1x128xf32, #tpu.memory_space<vmem>>, vector<1x128xf32>
    %4 = vector.broadcast %3 : vector<1x128xf32> to vector<8x128xf32>
    %5 = arith.addf %2, %4 : vector<8x128xf32>
    %6 = vector.extract_strided_slice %5 {offsets = [0, 0], sizes = [1, 128], strides = [1, 1]} : vector<8x128xf32> to vector<1x128xf32>
    %7 = vector.extract_strided_slice %5 {offsets = [1, 0], sizes = [1, 128], strides = [1, 1]} : vector<8x128xf32> to vector<1x128xf32>
    %8 = vector.extract_strided_slice %5 {offsets = [2, 0], sizes = [1, 128], strides = [1, 1]} : vector<8x128xf32> to vector<1x128xf32>
    %9 = vector.extract_strided_slice %5 {offsets = [3, 0], sizes = [1, 128], strides = [1, 1]} : vector<8x128xf32> to vector<1x128xf32>
    %10 = vector.extract_strided_slice %5 {offsets = [4, 0], sizes = [1, 128], strides = [1, 1]} : vector<8x128xf32> to vector<1x128xf32>
    %11 = vector.extract_strided_slice %5 {offsets = [5, 0], sizes = [1, 128], strides = [1, 1]} : vector<8x128xf32> to vector<1x128xf32>
    %12 = vector.extract_strided_slice %5 {offsets = [6, 0], sizes = [1, 128], strides = [1, 1]} : vector<8x128xf32> to vector<1x128xf32>
    %13 = vector.extract_strided_slice %5 {offsets = [7, 0], sizes = [1, 128], strides = [1, 1]} : vector<8x128xf32> to vector<1x128xf32>
    %c0_5 = arith.constant 0 : index
    %c0_6 = arith.constant 0 : index
    %14 = vector.load %arg2[%c0_5, %c0_6] : memref<32x128xbf16, #tpu.memory_space<vmem>>, vector<32x128xbf16>
    %cst_7 = arith.constant 0.000000e+00 : f32
    %15 = vector.broadcast %cst_7 : f32 to vector<1x32xf32>
    %cst_8 = arith.constant 0.000000e+00 : f32
    %16 = vector.broadcast %cst_8 : f32 to vector<1x32xf32>
    %17 = arith.truncf %15 : vector<1x32xf32> to vector<1x32xbf16>
    %cst_9 = arith.constant dense<0.000000e+00> : vector<1x128xf32>
    %18 = tpu.matmul %17, %14, %cst_9 {dimension_numbers = #tpu.dot_dimension_numbers<[1], [0], [0], [1], [0, 0, 1, 1], [], []>} : vector<1x32xbf16>, vector<32x128xbf16>, vector<1x128xf32> -> vector<1x128xf32>
    %19 = arith.addf %6, %18 : vector<1x128xf32>
    %cst_10 = arith.constant 5.000000e-01 : f32
    %20 = vector.broadcast %cst_10 : f32 to vector<1x128xf32>
    %21 = arith.mulf %20, %19 : vector<1x128xf32>
    %22 = math.tanh %21 : vector<1x128xf32>
    %cst_11 = arith.constant 5.000000e-01 : f32
    %23 = vector.broadcast %cst_11 : f32 to vector<1x128xf32>
    %24 = arith.mulf %23, %22 : vector<1x128xf32>
    %cst_12 = arith.constant 5.000000e-01 : f32
    %25 = vector.broadcast %cst_12 : f32 to vector<1x128xf32>
    %26 = arith.addf %24, %25 : vector<1x128xf32>
    %27 = math.tanh %19 : vector<1x128xf32>
    %28 = vector.extract_strided_slice %26 {offsets = [0, 0], sizes = [1, 32], strides = [1, 1]} : vector<1x128xf32> to vector<1x32xf32>
    %29 = vector.extract_strided_slice %26 {offsets = [0, 32], sizes = [1, 32], strides = [1, 1]} : vector<1x128xf32> to vector<1x32xf32>
    %30 = vector.extract_strided_slice %27 {offsets = [0, 64], sizes = [1, 32], strides = [1, 1]} : vector<1x128xf32> to vector<1x32xf32>
    %31 = vector.extract_strided_slice %26 {offsets = [0, 96], sizes = [1, 32], strides = [1, 1]} : vector<1x128xf32> to vector<1x32xf32>
    %32 = arith.mulf %29, %16 : vector<1x32xf32>
    %33 = arith.mulf %28, %30 : vector<1x32xf32>
    %34 = arith.addf %32, %33 : vector<1x32xf32>
    %35 = math.tanh %34 : vector<1x32xf32>
    %36 = arith.mulf %31, %35 : vector<1x32xf32>
    %37 = arith.truncf %36 : vector<1x32xf32> to vector<1x32xbf16>
    %cst_13 = arith.constant dense<0.000000e+00> : vector<1x128xf32>
    %38 = tpu.matmul %37, %14, %cst_13 {dimension_numbers = #tpu.dot_dimension_numbers<[1], [0], [0], [1], [0, 0, 1, 1], [], []>} : vector<1x32xbf16>, vector<32x128xbf16>, vector<1x128xf32> -> vector<1x128xf32>
    %39 = arith.addf %7, %38 : vector<1x128xf32>
    %cst_14 = arith.constant 5.000000e-01 : f32
    %40 = vector.broadcast %cst_14 : f32 to vector<1x128xf32>
    %41 = arith.mulf %40, %39 : vector<1x128xf32>
    %42 = math.tanh %41 : vector<1x128xf32>
    %cst_15 = arith.constant 5.000000e-01 : f32
    %43 = vector.broadcast %cst_15 : f32 to vector<1x128xf32>
    %44 = arith.mulf %43, %42 : vector<1x128xf32>
    %cst_16 = arith.constant 5.000000e-01 : f32
    %45 = vector.broadcast %cst_16 : f32 to vector<1x128xf32>
    %46 = arith.addf %44, %45 : vector<1x128xf32>
    %47 = math.tanh %39 : vector<1x128xf32>
    %48 = vector.extract_strided_slice %46 {offsets = [0, 0], sizes = [1, 32], strides = [1, 1]} : vector<1x128xf32> to vector<1x32xf32>
    %49 = vector.extract_strided_slice %46 {offsets = [0, 32], sizes = [1, 32], strides = [1, 1]} : vector<1x128xf32> to vector<1x32xf32>
    %50 = vector.extract_strided_slice %47 {offsets = [0, 64], sizes = [1, 32], strides = [1, 1]} : vector<1x128xf32> to vector<1x32xf32>
    %51 = vector.extract_strided_slice %46 {offsets = [0, 96], sizes = [1, 32], strides = [1, 1]} : vector<1x128xf32> to vector<1x32xf32>
    %52 = arith.mulf %49, %34 : vector<1x32xf32>
    %53 = arith.mulf %48, %50 : vector<1x32xf32>
    %54 = arith.addf %52, %53 : vector<1x32xf32>
    %55 = math.tanh %54 : vector<1x32xf32>
    %56 = arith.mulf %51, %55 : vector<1x32xf32>
    %57 = arith.truncf %56 : vector<1x32xf32> to vector<1x32xbf16>
    %cst_17 = arith.constant dense<0.000000e+00> : vector<1x128xf32>
    %58 = tpu.matmul %57, %14, %cst_17 {dimension_numbers = #tpu.dot_dimension_numbers<[1], [0], [0], [1], [0, 0, 1, 1], [], []>} : vector<1x32xbf16>, vector<32x128xbf16>, vector<1x128xf32> -> vector<1x128xf32>
    %59 = arith.addf %8, %58 : vector<1x128xf32>
    %cst_18 = arith.constant 5.000000e-01 : f32
    %60 = vector.broadcast %cst_18 : f32 to vector<1x128xf32>
    %61 = arith.mulf %60, %59 : vector<1x128xf32>
    %62 = math.tanh %61 : vector<1x128xf32>
    %cst_19 = arith.constant 5.000000e-01 : f32
    %63 = vector.broadcast %cst_19 : f32 to vector<1x128xf32>
    %64 = arith.mulf %63, %62 : vector<1x128xf32>
    %cst_20 = arith.constant 5.000000e-01 : f32
    %65 = vector.broadcast %cst_20 : f32 to vector<1x128xf32>
    %66 = arith.addf %64, %65 : vector<1x128xf32>
    %67 = math.tanh %59 : vector<1x128xf32>
    %68 = vector.extract_strided_slice %66 {offsets = [0, 0], sizes = [1, 32], strides = [1, 1]} : vector<1x128xf32> to vector<1x32xf32>
    %69 = vector.extract_strided_slice %66 {offsets = [0, 32], sizes = [1, 32], strides = [1, 1]} : vector<1x128xf32> to vector<1x32xf32>
    %70 = vector.extract_strided_slice %67 {offsets = [0, 64], sizes = [1, 32], strides = [1, 1]} : vector<1x128xf32> to vector<1x32xf32>
    %71 = vector.extract_strided_slice %66 {offsets = [0, 96], sizes = [1, 32], strides = [1, 1]} : vector<1x128xf32> to vector<1x32xf32>
    %72 = arith.mulf %69, %54 : vector<1x32xf32>
    %73 = arith.mulf %68, %70 : vector<1x32xf32>
    %74 = arith.addf %72, %73 : vector<1x32xf32>
    %75 = math.tanh %74 : vector<1x32xf32>
    %76 = arith.mulf %71, %75 : vector<1x32xf32>
    %77 = arith.truncf %76 : vector<1x32xf32> to vector<1x32xbf16>
    %cst_21 = arith.constant dense<0.000000e+00> : vector<1x128xf32>
    %78 = tpu.matmul %77, %14, %cst_21 {dimension_numbers = #tpu.dot_dimension_numbers<[1], [0], [0], [1], [0, 0, 1, 1], [], []>} : vector<1x32xbf16>, vector<32x128xbf16>, vector<1x128xf32> -> vector<1x128xf32>
    %79 = arith.addf %9, %78 : vector<1x128xf32>
    %cst_22 = arith.constant 5.000000e-01 : f32
    %80 = vector.broadcast %cst_22 : f32 to vector<1x128xf32>
    %81 = arith.mulf %80, %79 : vector<1x128xf32>
    %82 = math.tanh %81 : vector<1x128xf32>
    %cst_23 = arith.constant 5.000000e-01 : f32
    %83 = vector.broadcast %cst_23 : f32 to vector<1x128xf32>
    %84 = arith.mulf %83, %82 : vector<1x128xf32>
    %cst_24 = arith.constant 5.000000e-01 : f32
    %85 = vector.broadcast %cst_24 : f32 to vector<1x128xf32>
    %86 = arith.addf %84, %85 : vector<1x128xf32>
    %87 = math.tanh %79 : vector<1x128xf32>
    %88 = vector.extract_strided_slice %86 {offsets = [0, 0], sizes = [1, 32], strides = [1, 1]} : vector<1x128xf32> to vector<1x32xf32>
    %89 = vector.extract_strided_slice %86 {offsets = [0, 32], sizes = [1, 32], strides = [1, 1]} : vector<1x128xf32> to vector<1x32xf32>
    %90 = vector.extract_strided_slice %87 {offsets = [0, 64], sizes = [1, 32], strides = [1, 1]} : vector<1x128xf32> to vector<1x32xf32>
    %91 = vector.extract_strided_slice %86 {offsets = [0, 96], sizes = [1, 32], strides = [1, 1]} : vector<1x128xf32> to vector<1x32xf32>
    %92 = arith.mulf %89, %74 : vector<1x32xf32>
    %93 = arith.mulf %88, %90 : vector<1x32xf32>
    %94 = arith.addf %92, %93 : vector<1x32xf32>
    %95 = math.tanh %94 : vector<1x32xf32>
    %96 = arith.mulf %91, %95 : vector<1x32xf32>
    %97 = arith.truncf %96 : vector<1x32xf32> to vector<1x32xbf16>
    %cst_25 = arith.constant dense<0.000000e+00> : vector<1x128xf32>
    %98 = tpu.matmul %97, %14, %cst_25 {dimension_numbers = #tpu.dot_dimension_numbers<[1], [0], [0], [1], [0, 0, 1, 1], [], []>} : vector<1x32xbf16>, vector<32x128xbf16>, vector<1x128xf32> -> vector<1x128xf32>
    %99 = arith.addf %10, %98 : vector<1x128xf32>
    %cst_26 = arith.constant 5.000000e-01 : f32
    %100 = vector.broadcast %cst_26 : f32 to vector<1x128xf32>
    %101 = arith.mulf %100, %99 : vector<1x128xf32>
    %102 = math.tanh %101 : vector<1x128xf32>
    %cst_27 = arith.constant 5.000000e-01 : f32
    %103 = vector.broadcast %cst_27 : f32 to vector<1x128xf32>
    %104 = arith.mulf %103, %102 : vector<1x128xf32>
    %cst_28 = arith.constant 5.000000e-01 : f32
    %105 = vector.broadcast %cst_28 : f32 to vector<1x128xf32>
    %106 = arith.addf %104, %105 : vector<1x128xf32>
    %107 = math.tanh %99 : vector<1x128xf32>
    %108 = vector.extract_strided_slice %106 {offsets = [0, 0], sizes = [1, 32], strides = [1, 1]} : vector<1x128xf32> to vector<1x32xf32>
    %109 = vector.extract_strided_slice %106 {offsets = [0, 32], sizes = [1, 32], strides = [1, 1]} : vector<1x128xf32> to vector<1x32xf32>
    %110 = vector.extract_strided_slice %107 {offsets = [0, 64], sizes = [1, 32], strides = [1, 1]} : vector<1x128xf32> to vector<1x32xf32>
    %111 = vector.extract_strided_slice %106 {offsets = [0, 96], sizes = [1, 32], strides = [1, 1]} : vector<1x128xf32> to vector<1x32xf32>
    %112 = arith.mulf %109, %94 : vector<1x32xf32>
    %113 = arith.mulf %108, %110 : vector<1x32xf32>
    %114 = arith.addf %112, %113 : vector<1x32xf32>
    %115 = math.tanh %114 : vector<1x32xf32>
    %116 = arith.mulf %111, %115 : vector<1x32xf32>
    %117 = arith.truncf %116 : vector<1x32xf32> to vector<1x32xbf16>
    %cst_29 = arith.constant dense<0.000000e+00> : vector<1x128xf32>
    %118 = tpu.matmul %117, %14, %cst_29 {dimension_numbers = #tpu.dot_dimension_numbers<[1], [0], [0], [1], [0, 0, 1, 1], [], []>} : vector<1x32xbf16>, vector<32x128xbf16>, vector<1x128xf32> -> vector<1x128xf32>
    %119 = arith.addf %11, %118 : vector<1x128xf32>
    %cst_30 = arith.constant 5.000000e-01 : f32
    %120 = vector.broadcast %cst_30 : f32 to vector<1x128xf32>
    %121 = arith.mulf %120, %119 : vector<1x128xf32>
    %122 = math.tanh %121 : vector<1x128xf32>
    %cst_31 = arith.constant 5.000000e-01 : f32
    %123 = vector.broadcast %cst_31 : f32 to vector<1x128xf32>
    %124 = arith.mulf %123, %122 : vector<1x128xf32>
    %cst_32 = arith.constant 5.000000e-01 : f32
    %125 = vector.broadcast %cst_32 : f32 to vector<1x128xf32>
    %126 = arith.addf %124, %125 : vector<1x128xf32>
    %127 = math.tanh %119 : vector<1x128xf32>
    %128 = vector.extract_strided_slice %126 {offsets = [0, 0], sizes = [1, 32], strides = [1, 1]} : vector<1x128xf32> to vector<1x32xf32>
    %129 = vector.extract_strided_slice %126 {offsets = [0, 32], sizes = [1, 32], strides = [1, 1]} : vector<1x128xf32> to vector<1x32xf32>
    %130 = vector.extract_strided_slice %127 {offsets = [0, 64], sizes = [1, 32], strides = [1, 1]} : vector<1x128xf32> to vector<1x32xf32>
    %131 = vector.extract_strided_slice %126 {offsets = [0, 96], sizes = [1, 32], strides = [1, 1]} : vector<1x128xf32> to vector<1x32xf32>
    %132 = arith.mulf %129, %114 : vector<1x32xf32>
    %133 = arith.mulf %128, %130 : vector<1x32xf32>
    %134 = arith.addf %132, %133 : vector<1x32xf32>
    %135 = math.tanh %134 : vector<1x32xf32>
    %136 = arith.mulf %131, %135 : vector<1x32xf32>
    %137 = arith.truncf %136 : vector<1x32xf32> to vector<1x32xbf16>
    %cst_33 = arith.constant dense<0.000000e+00> : vector<1x128xf32>
    %138 = tpu.matmul %137, %14, %cst_33 {dimension_numbers = #tpu.dot_dimension_numbers<[1], [0], [0], [1], [0, 0, 1, 1], [], []>} : vector<1x32xbf16>, vector<32x128xbf16>, vector<1x128xf32> -> vector<1x128xf32>
    %139 = arith.addf %12, %138 : vector<1x128xf32>
    %cst_34 = arith.constant 5.000000e-01 : f32
    %140 = vector.broadcast %cst_34 : f32 to vector<1x128xf32>
    %141 = arith.mulf %140, %139 : vector<1x128xf32>
    %142 = math.tanh %141 : vector<1x128xf32>
    %cst_35 = arith.constant 5.000000e-01 : f32
    %143 = vector.broadcast %cst_35 : f32 to vector<1x128xf32>
    %144 = arith.mulf %143, %142 : vector<1x128xf32>
    %cst_36 = arith.constant 5.000000e-01 : f32
    %145 = vector.broadcast %cst_36 : f32 to vector<1x128xf32>
    %146 = arith.addf %144, %145 : vector<1x128xf32>
    %147 = math.tanh %139 : vector<1x128xf32>
    %148 = vector.extract_strided_slice %146 {offsets = [0, 0], sizes = [1, 32], strides = [1, 1]} : vector<1x128xf32> to vector<1x32xf32>
    %149 = vector.extract_strided_slice %146 {offsets = [0, 32], sizes = [1, 32], strides = [1, 1]} : vector<1x128xf32> to vector<1x32xf32>
    %150 = vector.extract_strided_slice %147 {offsets = [0, 64], sizes = [1, 32], strides = [1, 1]} : vector<1x128xf32> to vector<1x32xf32>
    %151 = vector.extract_strided_slice %146 {offsets = [0, 96], sizes = [1, 32], strides = [1, 1]} : vector<1x128xf32> to vector<1x32xf32>
    %152 = arith.mulf %149, %134 : vector<1x32xf32>
    %153 = arith.mulf %148, %150 : vector<1x32xf32>
    %154 = arith.addf %152, %153 : vector<1x32xf32>
    %155 = math.tanh %154 : vector<1x32xf32>
    %156 = arith.mulf %151, %155 : vector<1x32xf32>
    %157 = arith.truncf %156 : vector<1x32xf32> to vector<1x32xbf16>
    %cst_37 = arith.constant dense<0.000000e+00> : vector<1x128xf32>
    %158 = tpu.matmul %157, %14, %cst_37 {dimension_numbers = #tpu.dot_dimension_numbers<[1], [0], [0], [1], [0, 0, 1, 1], [], []>} : vector<1x32xbf16>, vector<32x128xbf16>, vector<1x128xf32> -> vector<1x128xf32>
    %159 = arith.addf %13, %158 : vector<1x128xf32>
    %cst_38 = arith.constant 5.000000e-01 : f32
    %160 = vector.broadcast %cst_38 : f32 to vector<1x128xf32>
    %161 = arith.mulf %160, %159 : vector<1x128xf32>
    %162 = math.tanh %161 : vector<1x128xf32>
    %cst_39 = arith.constant 5.000000e-01 : f32
    %163 = vector.broadcast %cst_39 : f32 to vector<1x128xf32>
    %164 = arith.mulf %163, %162 : vector<1x128xf32>
    %cst_40 = arith.constant 5.000000e-01 : f32
    %165 = vector.broadcast %cst_40 : f32 to vector<1x128xf32>
    %166 = arith.addf %164, %165 : vector<1x128xf32>
    %167 = math.tanh %159 : vector<1x128xf32>
    %168 = vector.extract_strided_slice %166 {offsets = [0, 0], sizes = [1, 32], strides = [1, 1]} : vector<1x128xf32> to vector<1x32xf32>
    %169 = vector.extract_strided_slice %166 {offsets = [0, 32], sizes = [1, 32], strides = [1, 1]} : vector<1x128xf32> to vector<1x32xf32>
    %170 = vector.extract_strided_slice %167 {offsets = [0, 64], sizes = [1, 32], strides = [1, 1]} : vector<1x128xf32> to vector<1x32xf32>
    %171 = vector.extract_strided_slice %166 {offsets = [0, 96], sizes = [1, 32], strides = [1, 1]} : vector<1x128xf32> to vector<1x32xf32>
    %172 = arith.mulf %169, %154 : vector<1x32xf32>
    %173 = arith.mulf %168, %170 : vector<1x32xf32>
    %174 = arith.addf %172, %173 : vector<1x32xf32>
    %175 = math.tanh %174 : vector<1x32xf32>
    %176 = arith.mulf %171, %175 : vector<1x32xf32>
    %177 = tpu.concatenate %36, %56, %76, %96, %116, %136, %156, %176 in 0 : vector<1x32xf32>, vector<1x32xf32>, vector<1x32xf32>, vector<1x32xf32>, vector<1x32xf32>, vector<1x32xf32>, vector<1x32xf32>, vector<1x32xf32> -> vector<8x32xf32>
    %178 = arith.truncf %177 : vector<8x32xf32> to vector<8x32xbf16>
    %c0_41 = arith.constant 0 : index
    %c0_42 = arith.constant 0 : index
    %179 = vector.load %arg4[%c0_41, %c0_42] : memref<32x128xbf16, #tpu.memory_space<vmem>>, vector<32x128xbf16>
    %cst_43 = arith.constant dense<0.000000e+00> : vector<8x128xf32>
    %180 = tpu.matmul %178, %179, %cst_43 {dimension_numbers = #tpu.dot_dimension_numbers<[1], [0], [0], [1], [0, 0, 1, 1], [], []>} : vector<8x32xbf16>, vector<32x128xbf16>, vector<8x128xf32> -> vector<8x128xf32>
    %c0_44 = arith.constant 0 : index
    %c0_45 = arith.constant 0 : index
    %181 = vector.load %arg6[%c0_44, %c0_45] : memref<1x128xf32, #tpu.memory_space<vmem>>, vector<1x128xf32>
    %182 = vector.broadcast %181 : vector<1x128xf32> to vector<8x128xf32>
    %183 = arith.addf %180, %182 : vector<8x128xf32>
    %184 = vector.extract_strided_slice %183 {offsets = [0, 0], sizes = [1, 128], strides = [1, 1]} : vector<8x128xf32> to vector<1x128xf32>
    %185 = vector.extract_strided_slice %183 {offsets = [1, 0], sizes = [1, 128], strides = [1, 1]} : vector<8x128xf32> to vector<1x128xf32>
    %186 = vector.extract_strided_slice %183 {offsets = [2, 0], sizes = [1, 128], strides = [1, 1]} : vector<8x128xf32> to vector<1x128xf32>
    %187 = vector.extract_strided_slice %183 {offsets = [3, 0], sizes = [1, 128], strides = [1, 1]} : vector<8x128xf32> to vector<1x128xf32>
    %188 = vector.extract_strided_slice %183 {offsets = [4, 0], sizes = [1, 128], strides = [1, 1]} : vector<8x128xf32> to vector<1x128xf32>
    %189 = vector.extract_strided_slice %183 {offsets = [5, 0], sizes = [1, 128], strides = [1, 1]} : vector<8x128xf32> to vector<1x128xf32>
    %190 = vector.extract_strided_slice %183 {offsets = [6, 0], sizes = [1, 128], strides = [1, 1]} : vector<8x128xf32> to vector<1x128xf32>
    %191 = vector.extract_strided_slice %183 {offsets = [7, 0], sizes = [1, 128], strides = [1, 1]} : vector<8x128xf32> to vector<1x128xf32>
    %c0_46 = arith.constant 0 : index
    %c0_47 = arith.constant 0 : index
    %192 = vector.load %arg5[%c0_46, %c0_47] : memref<32x128xbf16, #tpu.memory_space<vmem>>, vector<32x128xbf16>
    %cst_48 = arith.constant 0.000000e+00 : f32
    %193 = vector.broadcast %cst_48 : f32 to vector<1x32xf32>
    %cst_49 = arith.constant 0.000000e+00 : f32
    %194 = vector.broadcast %cst_49 : f32 to vector<1x32xf32>
    %195 = arith.truncf %193 : vector<1x32xf32> to vector<1x32xbf16>
    %cst_50 = arith.constant dense<0.000000e+00> : vector<1x128xf32>
    %196 = tpu.matmul %195, %192, %cst_50 {dimension_numbers = #tpu.dot_dimension_numbers<[1], [0], [0], [1], [0, 0, 1, 1], [], []>} : vector<1x32xbf16>, vector<32x128xbf16>, vector<1x128xf32> -> vector<1x128xf32>
    %197 = arith.addf %184, %196 : vector<1x128xf32>
    %cst_51 = arith.constant 5.000000e-01 : f32
    %198 = vector.broadcast %cst_51 : f32 to vector<1x128xf32>
    %199 = arith.mulf %198, %197 : vector<1x128xf32>
    %200 = math.tanh %199 : vector<1x128xf32>
    %cst_52 = arith.constant 5.000000e-01 : f32
    %201 = vector.broadcast %cst_52 : f32 to vector<1x128xf32>
    %202 = arith.mulf %201, %200 : vector<1x128xf32>
    %cst_53 = arith.constant 5.000000e-01 : f32
    %203 = vector.broadcast %cst_53 : f32 to vector<1x128xf32>
    %204 = arith.addf %202, %203 : vector<1x128xf32>
    %205 = math.tanh %197 : vector<1x128xf32>
    %206 = vector.extract_strided_slice %204 {offsets = [0, 0], sizes = [1, 32], strides = [1, 1]} : vector<1x128xf32> to vector<1x32xf32>
    %207 = vector.extract_strided_slice %204 {offsets = [0, 32], sizes = [1, 32], strides = [1, 1]} : vector<1x128xf32> to vector<1x32xf32>
    %208 = vector.extract_strided_slice %205 {offsets = [0, 64], sizes = [1, 32], strides = [1, 1]} : vector<1x128xf32> to vector<1x32xf32>
    %209 = vector.extract_strided_slice %204 {offsets = [0, 96], sizes = [1, 32], strides = [1, 1]} : vector<1x128xf32> to vector<1x32xf32>
    %210 = arith.mulf %207, %194 : vector<1x32xf32>
    %211 = arith.mulf %206, %208 : vector<1x32xf32>
    %212 = arith.addf %210, %211 : vector<1x32xf32>
    %213 = math.tanh %212 : vector<1x32xf32>
    %214 = arith.mulf %209, %213 : vector<1x32xf32>
    %215 = arith.truncf %214 : vector<1x32xf32> to vector<1x32xbf16>
    %cst_54 = arith.constant dense<0.000000e+00> : vector<1x128xf32>
    %216 = tpu.matmul %215, %192, %cst_54 {dimension_numbers = #tpu.dot_dimension_numbers<[1], [0], [0], [1], [0, 0, 1, 1], [], []>} : vector<1x32xbf16>, vector<32x128xbf16>, vector<1x128xf32> -> vector<1x128xf32>
    %217 = arith.addf %185, %216 : vector<1x128xf32>
    %cst_55 = arith.constant 5.000000e-01 : f32
    %218 = vector.broadcast %cst_55 : f32 to vector<1x128xf32>
    %219 = arith.mulf %218, %217 : vector<1x128xf32>
    %220 = math.tanh %219 : vector<1x128xf32>
    %cst_56 = arith.constant 5.000000e-01 : f32
    %221 = vector.broadcast %cst_56 : f32 to vector<1x128xf32>
    %222 = arith.mulf %221, %220 : vector<1x128xf32>
    %cst_57 = arith.constant 5.000000e-01 : f32
    %223 = vector.broadcast %cst_57 : f32 to vector<1x128xf32>
    %224 = arith.addf %222, %223 : vector<1x128xf32>
    %225 = math.tanh %217 : vector<1x128xf32>
    %226 = vector.extract_strided_slice %224 {offsets = [0, 0], sizes = [1, 32], strides = [1, 1]} : vector<1x128xf32> to vector<1x32xf32>
    %227 = vector.extract_strided_slice %224 {offsets = [0, 32], sizes = [1, 32], strides = [1, 1]} : vector<1x128xf32> to vector<1x32xf32>
    %228 = vector.extract_strided_slice %225 {offsets = [0, 64], sizes = [1, 32], strides = [1, 1]} : vector<1x128xf32> to vector<1x32xf32>
    %229 = vector.extract_strided_slice %224 {offsets = [0, 96], sizes = [1, 32], strides = [1, 1]} : vector<1x128xf32> to vector<1x32xf32>
    %230 = arith.mulf %227, %212 : vector<1x32xf32>
    %231 = arith.mulf %226, %228 : vector<1x32xf32>
    %232 = arith.addf %230, %231 : vector<1x32xf32>
    %233 = math.tanh %232 : vector<1x32xf32>
    %234 = arith.mulf %229, %233 : vector<1x32xf32>
    %235 = arith.truncf %234 : vector<1x32xf32> to vector<1x32xbf16>
    %cst_58 = arith.constant dense<0.000000e+00> : vector<1x128xf32>
    %236 = tpu.matmul %235, %192, %cst_58 {dimension_numbers = #tpu.dot_dimension_numbers<[1], [0], [0], [1], [0, 0, 1, 1], [], []>} : vector<1x32xbf16>, vector<32x128xbf16>, vector<1x128xf32> -> vector<1x128xf32>
    %237 = arith.addf %186, %236 : vector<1x128xf32>
    %cst_59 = arith.constant 5.000000e-01 : f32
    %238 = vector.broadcast %cst_59 : f32 to vector<1x128xf32>
    %239 = arith.mulf %238, %237 : vector<1x128xf32>
    %240 = math.tanh %239 : vector<1x128xf32>
    %cst_60 = arith.constant 5.000000e-01 : f32
    %241 = vector.broadcast %cst_60 : f32 to vector<1x128xf32>
    %242 = arith.mulf %241, %240 : vector<1x128xf32>
    %cst_61 = arith.constant 5.000000e-01 : f32
    %243 = vector.broadcast %cst_61 : f32 to vector<1x128xf32>
    %244 = arith.addf %242, %243 : vector<1x128xf32>
    %245 = math.tanh %237 : vector<1x128xf32>
    %246 = vector.extract_strided_slice %244 {offsets = [0, 0], sizes = [1, 32], strides = [1, 1]} : vector<1x128xf32> to vector<1x32xf32>
    %247 = vector.extract_strided_slice %244 {offsets = [0, 32], sizes = [1, 32], strides = [1, 1]} : vector<1x128xf32> to vector<1x32xf32>
    %248 = vector.extract_strided_slice %245 {offsets = [0, 64], sizes = [1, 32], strides = [1, 1]} : vector<1x128xf32> to vector<1x32xf32>
    %249 = vector.extract_strided_slice %244 {offsets = [0, 96], sizes = [1, 32], strides = [1, 1]} : vector<1x128xf32> to vector<1x32xf32>
    %250 = arith.mulf %247, %232 : vector<1x32xf32>
    %251 = arith.mulf %246, %248 : vector<1x32xf32>
    %252 = arith.addf %250, %251 : vector<1x32xf32>
    %253 = math.tanh %252 : vector<1x32xf32>
    %254 = arith.mulf %249, %253 : vector<1x32xf32>
    %255 = arith.truncf %254 : vector<1x32xf32> to vector<1x32xbf16>
    %cst_62 = arith.constant dense<0.000000e+00> : vector<1x128xf32>
    %256 = tpu.matmul %255, %192, %cst_62 {dimension_numbers = #tpu.dot_dimension_numbers<[1], [0], [0], [1], [0, 0, 1, 1], [], []>} : vector<1x32xbf16>, vector<32x128xbf16>, vector<1x128xf32> -> vector<1x128xf32>
    %257 = arith.addf %187, %256 : vector<1x128xf32>
    %cst_63 = arith.constant 5.000000e-01 : f32
    %258 = vector.broadcast %cst_63 : f32 to vector<1x128xf32>
    %259 = arith.mulf %258, %257 : vector<1x128xf32>
    %260 = math.tanh %259 : vector<1x128xf32>
    %cst_64 = arith.constant 5.000000e-01 : f32
    %261 = vector.broadcast %cst_64 : f32 to vector<1x128xf32>
    %262 = arith.mulf %261, %260 : vector<1x128xf32>
    %cst_65 = arith.constant 5.000000e-01 : f32
    %263 = vector.broadcast %cst_65 : f32 to vector<1x128xf32>
    %264 = arith.addf %262, %263 : vector<1x128xf32>
    %265 = math.tanh %257 : vector<1x128xf32>
    %266 = vector.extract_strided_slice %264 {offsets = [0, 0], sizes = [1, 32], strides = [1, 1]} : vector<1x128xf32> to vector<1x32xf32>
    %267 = vector.extract_strided_slice %264 {offsets = [0, 32], sizes = [1, 32], strides = [1, 1]} : vector<1x128xf32> to vector<1x32xf32>
    %268 = vector.extract_strided_slice %265 {offsets = [0, 64], sizes = [1, 32], strides = [1, 1]} : vector<1x128xf32> to vector<1x32xf32>
    %269 = vector.extract_strided_slice %264 {offsets = [0, 96], sizes = [1, 32], strides = [1, 1]} : vector<1x128xf32> to vector<1x32xf32>
    %270 = arith.mulf %267, %252 : vector<1x32xf32>
    %271 = arith.mulf %266, %268 : vector<1x32xf32>
    %272 = arith.addf %270, %271 : vector<1x32xf32>
    %273 = math.tanh %272 : vector<1x32xf32>
    %274 = arith.mulf %269, %273 : vector<1x32xf32>
    %275 = arith.truncf %274 : vector<1x32xf32> to vector<1x32xbf16>
    %cst_66 = arith.constant dense<0.000000e+00> : vector<1x128xf32>
    %276 = tpu.matmul %275, %192, %cst_66 {dimension_numbers = #tpu.dot_dimension_numbers<[1], [0], [0], [1], [0, 0, 1, 1], [], []>} : vector<1x32xbf16>, vector<32x128xbf16>, vector<1x128xf32> -> vector<1x128xf32>
    %277 = arith.addf %188, %276 : vector<1x128xf32>
    %cst_67 = arith.constant 5.000000e-01 : f32
    %278 = vector.broadcast %cst_67 : f32 to vector<1x128xf32>
    %279 = arith.mulf %278, %277 : vector<1x128xf32>
    %280 = math.tanh %279 : vector<1x128xf32>
    %cst_68 = arith.constant 5.000000e-01 : f32
    %281 = vector.broadcast %cst_68 : f32 to vector<1x128xf32>
    %282 = arith.mulf %281, %280 : vector<1x128xf32>
    %cst_69 = arith.constant 5.000000e-01 : f32
    %283 = vector.broadcast %cst_69 : f32 to vector<1x128xf32>
    %284 = arith.addf %282, %283 : vector<1x128xf32>
    %285 = math.tanh %277 : vector<1x128xf32>
    %286 = vector.extract_strided_slice %284 {offsets = [0, 0], sizes = [1, 32], strides = [1, 1]} : vector<1x128xf32> to vector<1x32xf32>
    %287 = vector.extract_strided_slice %284 {offsets = [0, 32], sizes = [1, 32], strides = [1, 1]} : vector<1x128xf32> to vector<1x32xf32>
    %288 = vector.extract_strided_slice %285 {offsets = [0, 64], sizes = [1, 32], strides = [1, 1]} : vector<1x128xf32> to vector<1x32xf32>
    %289 = vector.extract_strided_slice %284 {offsets = [0, 96], sizes = [1, 32], strides = [1, 1]} : vector<1x128xf32> to vector<1x32xf32>
    %290 = arith.mulf %287, %272 : vector<1x32xf32>
    %291 = arith.mulf %286, %288 : vector<1x32xf32>
    %292 = arith.addf %290, %291 : vector<1x32xf32>
    %293 = math.tanh %292 : vector<1x32xf32>
    %294 = arith.mulf %289, %293 : vector<1x32xf32>
    %295 = arith.truncf %294 : vector<1x32xf32> to vector<1x32xbf16>
    %cst_70 = arith.constant dense<0.000000e+00> : vector<1x128xf32>
    %296 = tpu.matmul %295, %192, %cst_70 {dimension_numbers = #tpu.dot_dimension_numbers<[1], [0], [0], [1], [0, 0, 1, 1], [], []>} : vector<1x32xbf16>, vector<32x128xbf16>, vector<1x128xf32> -> vector<1x128xf32>
    %297 = arith.addf %189, %296 : vector<1x128xf32>
    %cst_71 = arith.constant 5.000000e-01 : f32
    %298 = vector.broadcast %cst_71 : f32 to vector<1x128xf32>
    %299 = arith.mulf %298, %297 : vector<1x128xf32>
    %300 = math.tanh %299 : vector<1x128xf32>
    %cst_72 = arith.constant 5.000000e-01 : f32
    %301 = vector.broadcast %cst_72 : f32 to vector<1x128xf32>
    %302 = arith.mulf %301, %300 : vector<1x128xf32>
    %cst_73 = arith.constant 5.000000e-01 : f32
    %303 = vector.broadcast %cst_73 : f32 to vector<1x128xf32>
    %304 = arith.addf %302, %303 : vector<1x128xf32>
    %305 = math.tanh %297 : vector<1x128xf32>
    %306 = vector.extract_strided_slice %304 {offsets = [0, 0], sizes = [1, 32], strides = [1, 1]} : vector<1x128xf32> to vector<1x32xf32>
    %307 = vector.extract_strided_slice %304 {offsets = [0, 32], sizes = [1, 32], strides = [1, 1]} : vector<1x128xf32> to vector<1x32xf32>
    %308 = vector.extract_strided_slice %305 {offsets = [0, 64], sizes = [1, 32], strides = [1, 1]} : vector<1x128xf32> to vector<1x32xf32>
    %309 = vector.extract_strided_slice %304 {offsets = [0, 96], sizes = [1, 32], strides = [1, 1]} : vector<1x128xf32> to vector<1x32xf32>
    %310 = arith.mulf %307, %292 : vector<1x32xf32>
    %311 = arith.mulf %306, %308 : vector<1x32xf32>
    %312 = arith.addf %310, %311 : vector<1x32xf32>
    %313 = math.tanh %312 : vector<1x32xf32>
    %314 = arith.mulf %309, %313 : vector<1x32xf32>
    %315 = arith.truncf %314 : vector<1x32xf32> to vector<1x32xbf16>
    %cst_74 = arith.constant dense<0.000000e+00> : vector<1x128xf32>
    %316 = tpu.matmul %315, %192, %cst_74 {dimension_numbers = #tpu.dot_dimension_numbers<[1], [0], [0], [1], [0, 0, 1, 1], [], []>} : vector<1x32xbf16>, vector<32x128xbf16>, vector<1x128xf32> -> vector<1x128xf32>
    %317 = arith.addf %190, %316 : vector<1x128xf32>
    %cst_75 = arith.constant 5.000000e-01 : f32
    %318 = vector.broadcast %cst_75 : f32 to vector<1x128xf32>
    %319 = arith.mulf %318, %317 : vector<1x128xf32>
    %320 = math.tanh %319 : vector<1x128xf32>
    %cst_76 = arith.constant 5.000000e-01 : f32
    %321 = vector.broadcast %cst_76 : f32 to vector<1x128xf32>
    %322 = arith.mulf %321, %320 : vector<1x128xf32>
    %cst_77 = arith.constant 5.000000e-01 : f32
    %323 = vector.broadcast %cst_77 : f32 to vector<1x128xf32>
    %324 = arith.addf %322, %323 : vector<1x128xf32>
    %325 = math.tanh %317 : vector<1x128xf32>
    %326 = vector.extract_strided_slice %324 {offsets = [0, 0], sizes = [1, 32], strides = [1, 1]} : vector<1x128xf32> to vector<1x32xf32>
    %327 = vector.extract_strided_slice %324 {offsets = [0, 32], sizes = [1, 32], strides = [1, 1]} : vector<1x128xf32> to vector<1x32xf32>
    %328 = vector.extract_strided_slice %325 {offsets = [0, 64], sizes = [1, 32], strides = [1, 1]} : vector<1x128xf32> to vector<1x32xf32>
    %329 = vector.extract_strided_slice %324 {offsets = [0, 96], sizes = [1, 32], strides = [1, 1]} : vector<1x128xf32> to vector<1x32xf32>
    %330 = arith.mulf %327, %312 : vector<1x32xf32>
    %331 = arith.mulf %326, %328 : vector<1x32xf32>
    %332 = arith.addf %330, %331 : vector<1x32xf32>
    %333 = math.tanh %332 : vector<1x32xf32>
    %334 = arith.mulf %329, %333 : vector<1x32xf32>
    %335 = arith.truncf %334 : vector<1x32xf32> to vector<1x32xbf16>
    %cst_78 = arith.constant dense<0.000000e+00> : vector<1x128xf32>
    %336 = tpu.matmul %335, %192, %cst_78 {dimension_numbers = #tpu.dot_dimension_numbers<[1], [0], [0], [1], [0, 0, 1, 1], [], []>} : vector<1x32xbf16>, vector<32x128xbf16>, vector<1x128xf32> -> vector<1x128xf32>
    %337 = arith.addf %191, %336 : vector<1x128xf32>
    %cst_79 = arith.constant 5.000000e-01 : f32
    %338 = vector.broadcast %cst_79 : f32 to vector<1x128xf32>
    %339 = arith.mulf %338, %337 : vector<1x128xf32>
    %340 = math.tanh %339 : vector<1x128xf32>
    %cst_80 = arith.constant 5.000000e-01 : f32
    %341 = vector.broadcast %cst_80 : f32 to vector<1x128xf32>
    %342 = arith.mulf %341, %340 : vector<1x128xf32>
    %cst_81 = arith.constant 5.000000e-01 : f32
    %343 = vector.broadcast %cst_81 : f32 to vector<1x128xf32>
    %344 = arith.addf %342, %343 : vector<1x128xf32>
    %345 = math.tanh %337 : vector<1x128xf32>
    %346 = vector.extract_strided_slice %344 {offsets = [0, 0], sizes = [1, 32], strides = [1, 1]} : vector<1x128xf32> to vector<1x32xf32>
    %347 = vector.extract_strided_slice %344 {offsets = [0, 32], sizes = [1, 32], strides = [1, 1]} : vector<1x128xf32> to vector<1x32xf32>
    %348 = vector.extract_strided_slice %345 {offsets = [0, 64], sizes = [1, 32], strides = [1, 1]} : vector<1x128xf32> to vector<1x32xf32>
    %349 = vector.extract_strided_slice %344 {offsets = [0, 96], sizes = [1, 32], strides = [1, 1]} : vector<1x128xf32> to vector<1x32xf32>
    %350 = arith.mulf %347, %332 : vector<1x32xf32>
    %351 = arith.mulf %346, %348 : vector<1x32xf32>
    %352 = arith.addf %350, %351 : vector<1x32xf32>
    %353 = math.tanh %352 : vector<1x32xf32>
    %354 = arith.mulf %349, %353 : vector<1x32xf32>
    %355 = tpu.concatenate %214, %234, %254, %274, %294, %314, %334, %354 in 0 : vector<1x32xf32>, vector<1x32xf32>, vector<1x32xf32>, vector<1x32xf32>, vector<1x32xf32>, vector<1x32xf32>, vector<1x32xf32>, vector<1x32xf32> -> vector<8x32xf32>
    %c0_82 = arith.constant 0 : index
    %c0_83 = arith.constant 0 : index
    %356 = vector.load %arg7[%c0_82, %c0_83] : memref<32x8xf32, #tpu.memory_space<vmem>>, vector<32x8xf32>
    %cst_84 = arith.constant dense<0.000000e+00> : vector<8x8xf32>
    %357 = tpu.matmul %355, %356, %cst_84 {dimension_numbers = #tpu.dot_dimension_numbers<[1], [0], [0], [1], [0, 0, 1, 1], [], []>} : vector<8x32xf32>, vector<32x8xf32>, vector<8x8xf32> -> vector<8x8xf32>
    %c0_85 = arith.constant 0 : index
    %c0_86 = arith.constant 0 : index
    %358 = vector.load %arg8[%c0_85, %c0_86] : memref<1x8xf32, #tpu.memory_space<vmem>>, vector<1x8xf32>
    %359 = vector.broadcast %358 : vector<1x8xf32> to vector<8x8xf32>
    %360 = arith.addf %357, %359 : vector<8x8xf32>
    %c0_87 = arith.constant 0 : index
    %c0_88 = arith.constant 0 : index
    %361 = vector.load %arg9[%c0_87, %c0_88] : memref<8x8xf32, #tpu.memory_space<vmem>>, vector<8x8xf32>
    tpu.vector_store %arg9[%c0_87, %c0_88], %360 {strides = array<i32>} : memref<8x8xf32, #tpu.memory_space<vmem>>, vector<8x8xf32>,
    return
  }
}

</mosaic_0001>

<bundles_post_ra>
// kernel: tpu_custom_call.1
= control target key start
LH: loop header
LB: loop body
LE: loop exit
PB: predicated region body
PF: predicated region fallthrough
CT: control target
= control target key end

     0   :  { %14 = vsyncpa [#allocation3], 0  ;;  %s2331_s0 = inlined_call_operand.hbm [shape: bf16[8,16], index: 0, kind: input, shape index: {}]   ;;  %s2332_s1 = inlined_call_operand.hbm [shape: bf16[16,128], index: 1, kind: input, shape index: {}]   ;;  %s2333_s2 = inlined_call_operand.vmem [shape: bf16[32,128], index: 2, kind: input, shape index: {}]   ;;  %s2334_s3 = inlined_call_operand.vmem [shape: f32[1,128], index: 3, kind: input, shape index: {}]   ;;  %s2335_s4 = inlined_call_operand.vmem [shape: bf16[32,128], index: 4, kind: input, shape index: {}]   ;;  %s2336_s5 = inlined_call_operand.vmem [shape: bf16[32,128], index: 5, kind: input, shape index: {}]   ;;  %s2337_s6 = inlined_call_operand.vmem [shape: f32[1,128], index: 6, kind: input, shape index: {}]   ;;  %s2338_s7 = inlined_call_operand.vmem [shape: f32[32,8], index: 7, kind: input, shape index: {}]   ;;  %s2339_s8 = inlined_call_operand.vmem [shape: f32[1,8], index: 8, kind: input, shape index: {}]   ;;  %s2340_s9 = inlined_call_operand.hbm [shape: f32[8,8], index: 9, kind: output, shape index: {}]  }
   0x1   :  { %15 = vsyncpa [#allocation6], 0 }
   0x2   :  { %16 = vsyncpa [#allocation4], 0  ;;  %s1979_s30 = smov [#allocation2]   ;;  %s1980_s11 = smov [#allocation5]  }
   0x3   :  { %s23_s10 = sshll.u32 %s1979_s30, 4  ;;  %s32_s12 = sshll.u32 %s1980_s11, 4  ;;  %s24_s10 = int_to_ptr.vmem [resolvable:$true] %s23_s10  ;;  %s33_s12 = int_to_ptr.vmem [resolvable:$true] %s32_s12 }
   0x4   :  { %s1921_s13 = scalar_lea.vmem %s24_s10, 64  ;;  %p1926_p1 = scmp.lt.s32.totalorder %s24_s10, %s24_s10 }
   0x5   :  { %p1922_p0 = scmp.ne.s32.totalorder %s24_s10, %s1921_s13  ;;  %p1927_p2 = scmp.lt.s32.totalorder %s1921_s13, %s1921_s13 }
   0x7   :  { %p1928_p3 = por %p1927_p2, %p1926_p1 }
   0x9   :  { %p1929_p4 = pnand %p1928_p3, %p1922_p0 }
   0xb   :  { %1932 = shalt.err (!%p1929_p4)
}
   0xc   :  { %26 = dma.hbm_to_vmem [thread:$0]  %s2331_s0, 64, %s24_s10, [#allocation3]  }
   0xd   :  { %s1941_s16 = scalar_lea.vmem %s33_s12, 128  ;;  %p1946_p6 = scmp.lt.s32.totalorder %s33_s12, %s33_s12 }
   0xe   :  { %p1942_p5 = scmp.ne.s32.totalorder %s33_s12, %s1941_s16  ;;  %p1947_p7 = scmp.lt.s32.totalorder %s1941_s16, %s1941_s16 }
  0x10   :  { %p1948_p8 = por %p1947_p7, %p1946_p6 }
  0x12   :  { %p1949_p9 = pnand %p1948_p8, %p1942_p5 }
  0x14   :  { %1952 = shalt.err (!%p1949_p9)
}
  0x15   :  { %s1981_s17 = smov 64   ;;  %s1982_s18 = smov 4  }
  0x16   :  { %38 = dma.hbm_to_vmem [thread:$0]  %s2332_s1, 128, %s33_s12, [#allocation6], %s1981_s17, %s1981_s17, %s1982_s18  }
  0x17   :  { %1973 = dma.done.wait [#allocation3], 64  }
  0x18   :  { %1974 = vsyncadd [#allocation3], 4294967232 }
  0x19   :  { %1975 = dma.done.wait [#allocation6], 128  }
  0x1a   :  { %1976 = vsyncadd [#allocation6], 4294967168  ;;  %v1983_v0 = vmov 0.0   ;;  %vm1984_vm0 = vmmov 0   ;;  %v1810_v1 = vld [vmem:[#allocation5] sm:$0xff]   ;;  %vm76_vm1 = vcmask 130048  }
  0x1b   :  { %1648 = vmatprep.subr.bf16.mxu0 %v1983_v0  ;;  %1654 = vmatprep.subr.bf16.mxu1 %v1983_v0  ;;  %v2055_v2 = vld [vmem:[%s2333_s2 + $0x8] sm:$0xff]   ;;  %v60_v3 = vld [vmem:[#allocation2] sm:$0xf]  ;;  %v1985_v5 = vmov 0   ;;  %vm136_vm2 = vcmask 261120   ;;  %vm746_vm3 = vcmask 1040384  }
  0x1c   :  { %1650 = vmatprep.mubr.msk.bf16.mxu0 %vm1984_vm0, %v1983_v0  ;;  %1658 = vmatprep.mubr.msk.bf16.mxu1 %vm1984_vm0, %v1983_v0  ;;  %v2061_v4 = vld [vmem:[%s2333_s2] sm:$0xff]   ;;  %vm748_vm4 = vcmask 1041408   ;;  %vm750_vm5 = vcmask 1042432   ;;  %vm752_vm6 = vcmask 1043456   ;;  %vm754_vm7 = vcmask 1044480  }
  0x1d   :  { %1649 = vmatpush3.bf16.msra.mxu0 %v1810_v1  ;;  %1655 = vmatpush3.bf16.msra.mxu1 %v2055_v2  ;;  %v1563_v6 = vld [vmem:[%s2334_s3] ss:$0 sm:$0xff]  ;;  %s1986_s3 = smov 32   ;;  %vm756_vm8 = vcmask 1045504   ;;  %vm758_vm9 = vcmask 1046528   ;;  %vm1545_vm10 = vcmask 64512  }
  0x1e   :  { %1662 = vmatprep.subr.bf16.mxu0 %v1983_v0  ;;  %1656 = vmatprep.subr.bf16.mxu1 %v1983_v0 }
  0x20   :  { %1651 = vmatmul.mubr.msk.bf16.vlgmr.msra.gmra.mxu0 %vm76_vm1, %v60_v3 }
  0x21   :  { %1663 = vmatpush3.bf16.msra.mxu0 %v2055_v2  ;;  %1666 = vmatprep.mubr.msk.bf16.mxu0 %vm1984_vm0, %v1983_v0 }
  0x22   :  { %1657 = vmatpush3.bf16.msra.mxu1 %v2061_v4  ;;  %1664 = vmatprep.subr.bf16.mxu0 %v1983_v0 }
  0x23   :  { %1670 = vmatprep.subr.bf16.mxu1 %v1983_v0 }
  0x25   :  { %1659 = vmatmul.mubr.bf16.vlgmr.msra.gmra.mxu1 %v1985_v5  ;;  %1665 = vmatpush3.bf16.msra.mxu0 %v2061_v4 }
  0x26   :  { %1671 = vmatpush3.bf16.msra.mxu1 %v2055_v2  ;;  %1674 = vmatprep.mubr.msk.bf16.mxu1 %vm1984_vm0, %v1983_v0 }
  0x27   :  { %1672 = vmatprep.subr.bf16.mxu1 %v1983_v0  ;;  %1678 = vmatprep.subr.bf16.mxu0 %v1983_v0 }
  0x2a   :  { %1673 = vmatpush3.bf16.msra.mxu1 %v2061_v4 }
  0x2b   :  { %1686 = vmatprep.subr.bf16.mxu1 %v1983_v0 }
  0xe0   :  { %v114_v7 = vpop.f32.mrf.mxu0 }
  0xe1   :  { %v2083_v8 = vadd.f32 %v1563_v6, %v114_v7 }
  0xe2   :  { %v1652_v9 = vpop.f32.mrf.mxu0 }
  0xe4   :  { %v117_v10 = vpop.f32.mrf.mxu0 }
  0xe5   :  { %v174_v11 = vpop.f32.mrf.mxu1 }
  0xe6   :  { %v180_v12 = vadd.f32 %v174_v11, %v2083_v8  ;;  %v1653_v13 = vpop.f32.mrf.mxu0 }
  0xe7   :  { %v1660_v14 = vpop.f32.mrf.mxu1 }
  0xe8   :  { %1817 = vtanh.f32 %v180_v12  ;;  %v181_v18 = vmul.f32 0.5, %v180_v12 }
  0xe9   :  { %v177_v15 = vpop.f32.mrf.mxu1 }
  0xea   :  { %1819 = vtanh.f32 %v181_v18 }
  0xeb   :  { %v1661_v16 = vpop.f32.mrf.mxu1 }
  0xf5   :  { %v1818_v17 = vpop.eup %1817 }
  0xf6   :  { %188 = vrot.lane.b32.xlu0 %v1818_v17, %s1981_s17 }
  0xf7   :  { %v1820_v19 = vpop.eup %1819 }
  0xf8   :  { %v183_v20 = vmul.f32 0.5, %v1820_v19 }
  0xfa   :  { %v184_v21 = vadd.f32 0.5, %v183_v20 }
  0xfc   :  { %v186_v24 = vmul.f32 0.0, %v184_v21 }
 0x168   :  { %v189_v22 = vpop.permute.xlu0 %188 }
 0x169   :  { %v191_v23 = vmul.f32 %v189_v22, %v184_v21 }
 0x16b   :  { %193 = vrot.lane.b32.xlu0 %v191_v23, %s1986_s3 }
 0x1dd   :  { %v194_v25 = vpop.permute.xlu0 %193 }
 0x1de   :  { %v196_v26 = vadd.f32 %v194_v25, %v186_v24 }
 0x1e0   :  { %1821 = vtanh.f32 %v196_v26  ;;  %v260_v45 = vrot.slane %v196_v26, 7 }
 0x1ed   :  { %v1822_v27 = vpop.eup %1821 }
 0x1ee   :  { %199 = vrot.lane.b32.xlu1 %v1822_v27, %s1981_s17 }
 0x260   :  { %v200_v28 = vpop.permute.xlu1 %199 }
 0x261   :  { %v2089_v29 = vmul.f32 %v200_v28, %v184_v21 }
 0x263   :  { %v203_v30 = vpack.c.bf16 %v2089_v29, %v2089_v29 }
 0x265   :  { %205 = vrot.lane.b32.xlu1 %v203_v30, %s1986_s3 }
 0x2d7   :  { %v206_v31 = vpop.permute.xlu1 %205 }
 0x2d8   :  { %1667 = vmatmul.mubr.msk.bf16.vlgmr.msra.gmra.mxu0 %vm136_vm2, %v206_v31 }
 0x2d9   :  { %1679 = vmatpush3.bf16.msra.mxu0 %v2055_v2  ;;  %1682 = vmatprep.mubr.msk.bf16.mxu0 %vm1984_vm0, %v1983_v0 }
 0x2da   :  { %1680 = vmatprep.subr.bf16.mxu0 %v1983_v0 }
 0x2dd   :  { %1681 = vmatpush3.bf16.msra.mxu0 %v2061_v4 }
 0x2de   :  { %1694 = vmatprep.subr.bf16.mxu0 %v1983_v0 }
 0x398   :  { %v244_v32 = vpop.f32.mrf.mxu0 }
 0x399   :  { %v251_v33 = vrot.slane %v244_v32, 7 }
 0x39a   :  { %v1668_v34 = vpop.f32.mrf.mxu0 }
 0x39b   :  { %v253_v35 = vadd.f32 %v251_v33, %v2083_v8 }
 0x39c   :  { %v247_v36 = vpop.f32.mrf.mxu0 }
 0x39d   :  { %1823 = vtanh.f32 %v253_v35  ;;  %v254_v39 = vmul.f32 0.5, %v253_v35 }
 0x39e   :  { %v1669_v37 = vpop.f32.mrf.mxu0 }
 0x39f   :  { %1825 = vtanh.f32 %v254_v39 }
 0x3aa   :  { %v1824_v38 = vpop.eup %1823 }
 0x3ab   :  { %264 = vrot.lane.b32.xlu0 %v1824_v38, %s1981_s17 }
 0x3ac   :  { %v1826_v40 = vpop.eup %1825 }
 0x3ad   :  { %v256_v41 = vmul.f32 0.5, %v1826_v40 }
 0x3af   :  { %v257_v42 = vadd.f32 0.5, %v256_v41 }
 0x3b1   :  { %v262_v46 = vmul.f32 %v260_v45, %v257_v42 }
 0x41d   :  { %v265_v43 = vpop.permute.xlu0 %264 }
 0x41e   :  { %v267_v44 = vmul.f32 %v265_v43, %v257_v42 }
 0x420   :  { %269 = vrot.lane.b32.xlu1 %v267_v44, %s1986_s3 }
 0x492   :  { %v270_v47 = vpop.permute.xlu1 %269 }
 0x493   :  { %v272_v48 = vadd.f32 %v270_v47, %v262_v46 }
 0x495   :  { %1827 = vtanh.f32 %v272_v48  ;;  %v338_v9 = vrot.slane %v272_v48, 7 }
 0x4a2   :  { %v1828_v49 = vpop.eup %1827 }
 0x4a3   :  { %275 = vrot.lane.b32.xlu0 %v1828_v49, %s1981_s17 }
 0x515   :  { %v276_v50 = vpop.permute.xlu0 %275 }
 0x516   :  { %v278_v51 = vmul.f32 %v276_v50, %v257_v42 }
 0x518   :  { %v279_v52 = vpack.c.bf16 %v278_v51, %v278_v51  ;;  %v747_v16 = vsel %vm746_vm3, %v2089_v29, %v278_v51 }
 0x51a   :  { %v281_v53 = vshrl.u32 %v279_v52, 16 }
 0x51c   :  { %283 = vrot.lane.b32.xlu1 %v281_v53, %s1986_s3 }
 0x58e   :  { %v284_v54 = vpop.permute.xlu1 %283 }
 0x58f   :  { %1675 = vmatmul.mubr.msk.bf16.vlgmr.msra.gmra.mxu1 %vm136_vm2, %v284_v54 }
 0x590   :  { %1687 = vmatpush3.bf16.msra.mxu1 %v2055_v2  ;;  %1690 = vmatprep.mubr.msk.bf16.mxu1 %vm1984_vm0, %v1983_v0 }
 0x591   :  { %1688 = vmatprep.subr.bf16.mxu1 %v1983_v0 }
 0x594   :  { %1689 = vmatpush3.bf16.msra.mxu1 %v2061_v4 }
 0x595   :  { %1702 = vmatprep.subr.bf16.mxu1 %v1983_v0 }
 0x64f   :  { %v322_v55 = vpop.f32.mrf.mxu1 }
 0x650   :  { %v329_v56 = vrot.slane %v322_v55, 6 }
 0x651   :  { %v1676_v57 = vpop.f32.mrf.mxu1 }
 0x652   :  { %v331_v58 = vadd.f32 %v329_v56, %v2083_v8 }
 0x653   :  { %v325_v59 = vpop.f32.mrf.mxu1 }
 0x654   :  { %1829 = vtanh.f32 %v331_v58  ;;  %v332_v62 = vmul.f32 0.5, %v331_v58 }
 0x655   :  { %v1677_v60 = vpop.f32.mrf.mxu1 }
 0x656   :  { %1831 = vtanh.f32 %v332_v62 }
 0x661   :  { %v1830_v61 = vpop.eup %1829 }
 0x662   :  { %342 = vrot.lane.b32.xlu0 %v1830_v61, %s1981_s17 }
 0x663   :  { %v1832_v63 = vpop.eup %1831 }
 0x664   :  { %v334_v1 = vmul.f32 0.5, %v1832_v63 }
 0x666   :  { %v335_v3 = vadd.f32 0.5, %v334_v1 }
 0x668   :  { %v340_v10 = vmul.f32 %v338_v9, %v335_v3 }
 0x6d4   :  { %v343_v6 = vpop.permute.xlu0 %342 }
 0x6d5   :  { %v345_v7 = vmul.f32 %v343_v6, %v335_v3 }
 0x6d7   :  { %347 = vrot.lane.b32.xlu1 %v345_v7, %s1986_s3 }
 0x749   :  { %v348_v11 = vpop.permute.xlu1 %347 }
 0x74a   :  { %v350_v12 = vadd.f32 %v348_v11, %v340_v10 }
 0x74c   :  { %1833 = vtanh.f32 %v350_v12  ;;  %v415_v34 = vrot.slane %v350_v12, 7 }
 0x759   :  { %v1834_v13 = vpop.eup %1833 }
 0x75a   :  { %353 = vrot.lane.b32.xlu0 %v1834_v13, %s1981_s17 }
 0x7cc   :  { %v354_v14 = vpop.permute.xlu0 %353 }
 0x7cd   :  { %v356_v15 = vmul.f32 %v354_v14, %v335_v3 }
 0x7cf   :  { %v357_v17 = vpack.c.bf16 %v356_v15, %v356_v15  ;;  %v749_v18 = vsel %vm748_vm4, %v747_v16, %v356_v15 }
 0x7d1   :  { %v359_v19 = vrot.slane %v357_v17, 1 }
 0x7d3   :  { %360 = vrot.lane.b32.xlu1 %v359_v19, %s1986_s3 }
 0x845   :  { %v361_v20 = vpop.permute.xlu1 %360 }
 0x846   :  { %1683 = vmatmul.mubr.msk.bf16.vlgmr.msra.gmra.mxu0 %vm136_vm2, %v361_v20 }
 0x847   :  { %1695 = vmatpush3.bf16.msra.mxu0 %v2055_v2  ;;  %1698 = vmatprep.mubr.msk.bf16.mxu0 %vm1984_vm0, %v1983_v0 }
 0x848   :  { %1696 = vmatprep.subr.bf16.mxu0 %v1983_v0 }
 0x84b   :  { %1697 = vmatpush3.bf16.msra.mxu0 %v2061_v4 }
 0x84c   :  { %1710 = vmatprep.subr.bf16.mxu0 %v1983_v0 }
 0x906   :  { %v399_v21 = vpop.f32.mrf.mxu0 }
 0x907   :  { %v406_v22 = vrot.slane %v399_v21, 5 }
 0x908   :  { %v1684_v23 = vpop.f32.mrf.mxu0 }
 0x909   :  { %v408_v24 = vadd.f32 %v406_v22, %v2083_v8 }
 0x90a   :  { %v402_v25 = vpop.f32.mrf.mxu0 }
 0x90b   :  { %1835 = vtanh.f32 %v408_v24  ;;  %v409_v28 = vmul.f32 0.5, %v408_v24 }
 0x90c   :  { %v1685_v26 = vpop.f32.mrf.mxu0 }
 0x90d   :  { %1837 = vtanh.f32 %v409_v28 }
 0x918   :  { %v1836_v27 = vpop.eup %1835 }
 0x919   :  { %419 = vrot.lane.b32.xlu0 %v1836_v27, %s1981_s17 }
 0x91a   :  { %v1838_v29 = vpop.eup %1837 }
 0x91b   :  { %v411_v30 = vmul.f32 0.5, %v1838_v29 }
 0x91d   :  { %v412_v31 = vadd.f32 0.5, %v411_v30 }
 0x91f   :  { %v417_v35 = vmul.f32 %v415_v34, %v412_v31 }
 0x98b   :  { %v420_v32 = vpop.permute.xlu0 %419 }
 0x98c   :  { %v422_v33 = vmul.f32 %v420_v32, %v412_v31 }
 0x98e   :  { %424 = vrot.lane.b32.xlu1 %v422_v33, %s1986_s3 }
 0xa00   :  { %v425_v36 = vpop.permute.xlu1 %424 }
 0xa01   :  { %v427_v37 = vadd.f32 %v425_v36, %v417_v35 }
 0xa03   :  { %1839 = vtanh.f32 %v427_v37  ;;  %v494_v59 = vrot.slane %v427_v37, 7 }
 0xa10   :  { %v1840_v38 = vpop.eup %1839 }
 0xa11   :  { %430 = vrot.lane.b32.xlu0 %v1840_v38, %s1981_s17 }
 0xa83   :  { %v431_v39 = vpop.permute.xlu0 %430 }
 0xa84   :  { %v433_v40 = vmul.f32 %v431_v39, %v412_v31 }
 0xa86   :  { %v434_v41 = vpack.c.bf16 %v433_v40, %v433_v40  ;;  %v751_v42 = vsel %vm750_vm5, %v749_v18, %v433_v40 }
 0xa88   :  { %v436_v43 = vshrl.u32 %v434_v41, 16 }
 0xa8a   :  { %v438_v44 = vrot.slane %v436_v43, 1 }
 0xa8c   :  { %439 = vrot.lane.b32.xlu1 %v438_v44, %s1986_s3 }
 0xafe   :  { %v440_v45 = vpop.permute.xlu1 %439 }
 0xaff   :  { %1691 = vmatmul.mubr.msk.bf16.vlgmr.msra.gmra.mxu1 %vm136_vm2, %v440_v45 }
 0xb00   :  { %1703 = vmatpush3.bf16.msra.mxu1 %v2055_v2  ;;  %1706 = vmatprep.mubr.msk.bf16.mxu1 %vm1984_vm0, %v1983_v0 }
 0xb01   :  { %1704 = vmatprep.subr.bf16.mxu1 %v1983_v0 }
 0xb04   :  { %1705 = vmatpush3.bf16.msra.mxu1 %v2061_v4 }
 0xb05   :  { %1718 = vmatprep.subr.bf16.mxu1 %v1983_v0 }
 0xbbf   :  { %v478_v46 = vpop.f32.mrf.mxu1 }
 0xbc0   :  { %v485_v47 = vrot.slane %v478_v46, 4 }
 0xbc1   :  { %v1692_v48 = vpop.f32.mrf.mxu1 }
 0xbc2   :  { %v487_v49 = vadd.f32 %v485_v47, %v2083_v8 }
 0xbc3   :  { %v481_v50 = vpop.f32.mrf.mxu1 }
 0xbc4   :  { %1841 = vtanh.f32 %v487_v49  ;;  %v488_v53 = vmul.f32 0.5, %v487_v49 }
 0xbc5   :  { %v1693_v51 = vpop.f32.mrf.mxu1 }
 0xbc6   :  { %1843 = vtanh.f32 %v488_v53 }
 0xbd1   :  { %v1842_v52 = vpop.eup %1841 }
 0xbd2   :  { %498 = vrot.lane.b32.xlu0 %v1842_v52, %s1981_s17 }
 0xbd3   :  { %v1844_v54 = vpop.eup %1843 }
 0xbd4   :  { %v490_v55 = vmul.f32 0.5, %v1844_v54 }
 0xbd6   :  { %v491_v56 = vadd.f32 0.5, %v490_v55 }
 0xbd8   :  { %v496_v60 = vmul.f32 %v494_v59, %v491_v56 }
 0xc44   :  { %v499_v57 = vpop.permute.xlu0 %498 }
 0xc45   :  { %v501_v58 = vmul.f32 %v499_v57, %v491_v56 }
 0xc47   :  { %503 = vrot.lane.b32.xlu1 %v501_v58, %s1986_s3 }
 0xcb9   :  { %v504_v61 = vpop.permute.xlu1 %503 }
 0xcba   :  { %v506_v62 = vadd.f32 %v504_v61, %v496_v60 }
 0xcbc   :  { %1845 = vtanh.f32 %v506_v62  ;;  %v571_v22 = vrot.slane %v506_v62, 7 }
 0xcc9   :  { %v1846_v63 = vpop.eup %1845 }
 0xcca   :  { %509 = vrot.lane.b32.xlu0 %v1846_v63, %s1981_s17 }
 0xd3c   :  { %v510_v1 = vpop.permute.xlu0 %509 }
 0xd3d   :  { %v512_v3 = vmul.f32 %v510_v1, %v491_v56 }
 0xd3f   :  { %v513_v6 = vpack.c.bf16 %v512_v3, %v512_v3  ;;  %v753_v7 = vsel %vm752_vm6, %v751_v42, %v512_v3 }
 0xd41   :  { %v515_v9 = vrot.slane %v513_v6, 2 }
 0xd43   :  { %516 = vrot.lane.b32.xlu1 %v515_v9, %s1986_s3 }
 0xdb5   :  { %v517_v10 = vpop.permute.xlu1 %516 }
 0xdb6   :  { %1699 = vmatmul.mubr.msk.bf16.vlgmr.msra.gmra.mxu0 %vm136_vm2, %v517_v10 }
 0xdb7   :  { %1711 = vmatpush3.bf16.msra.mxu0 %v2055_v2  ;;  %1714 = vmatprep.mubr.msk.bf16.mxu0 %vm1984_vm0, %v1983_v0 }
 0xdb8   :  { %1712 = vmatprep.subr.bf16.mxu0 %v1983_v0 }
 0xdbb   :  { %1713 = vmatpush3.bf16.msra.mxu0 %v2061_v4 }
 0xdbc   :  { %1726 = vmatprep.subr.bf16.mxu0 %v1983_v0 }
 0xe76   :  { %v555_v11 = vpop.f32.mrf.mxu0 }
 0xe77   :  { %v562_v12 = vrot.slane %v555_v11, 3 }
 0xe78   :  { %v1700_v13 = vpop.f32.mrf.mxu0 }
 0xe79   :  { %v564_v14 = vadd.f32 %v562_v12, %v2083_v8 }
 0xe7a   :  { %v558_v15 = vpop.f32.mrf.mxu0 }
 0xe7b   :  { %1847 = vtanh.f32 %v564_v14  ;;  %v565_v2 = vmul.f32 0.5, %v564_v14 }
 0xe7c   :  { %v1701_v16 = vpop.f32.mrf.mxu0 }
 0xe7d   :  { %1849 = vtanh.f32 %v565_v2  ;;  %v1814_v16 = vld [vmem:[%s2335_s4 + $0x8] sm:$0xff]   ;;  %v1816_v2 = vld [vmem:[%s2335_s4] sm:$0xff]  }
 0xe88   :  { %v1848_v17 = vpop.eup %1847 }
 0xe89   :  { %575 = vrot.lane.b32.xlu0 %v1848_v17, %s1981_s17  ;;  %v2187_v17 = vld [vmem:[%s2336_s5] sm:$0xff]  }
 0xe8a   :  { %v1850_v18 = vpop.eup %1849 }
 0xe8b   :  { %v567_v19 = vmul.f32 0.5, %v1850_v18 }
 0xe8d   :  { %v568_v20 = vadd.f32 0.5, %v567_v19 }
 0xe8f   :  { %v573_v23 = vmul.f32 %v571_v22, %v568_v20 }
 0xefb   :  { %v576_v21 = vpop.permute.xlu0 %575 }
 0xefc   :  { %v578_v4 = vmul.f32 %v576_v21, %v568_v20 }
 0xefe   :  { %580 = vrot.lane.b32.xlu1 %v578_v4, %s1986_s3 }
 0xf70   :  { %v581_v24 = vpop.permute.xlu1 %580 }
 0xf71   :  { %v583_v25 = vadd.f32 %v581_v24, %v573_v23 }
 0xf73   :  { %1851 = vtanh.f32 %v583_v25  ;;  %v650_v47 = vrot.slane %v583_v25, 7 }
 0xf80   :  { %v1852_v26 = vpop.eup %1851 }
 0xf81   :  { %586 = vrot.lane.b32.xlu0 %v1852_v26, %s1981_s17  ;;  %v1575_v26 = vld [vmem:[%s2337_s6] ss:$0 sm:$0xff] }
 0xff3   :  { %v587_v27 = vpop.permute.xlu0 %586 }
 0xff4   :  { %v589_v28 = vmul.f32 %v587_v27, %v568_v20 }
 0xff6   :  { %v590_v29 = vpack.c.bf16 %v589_v28, %v589_v28  ;;  %v755_v30 = vsel %vm754_vm7, %v753_v7, %v589_v28 }
 0xff8   :  { %v592_v31 = vshrl.u32 %v590_v29, 16 }
 0xffa   :  { %v594_v32 = vrot.slane %v592_v31, 2 }
 0xffc   :  { %595 = vrot.lane.b32.xlu1 %v594_v32, %s1986_s3 }
0x106e   :  { %v596_v33 = vpop.permute.xlu1 %595 }
0x106f   :  { %1707 = vmatmul.mubr.msk.bf16.vlgmr.msra.gmra.mxu1 %vm136_vm2, %v596_v33 }
0x1070   :  { %1722 = vmatprep.mubr.msk.bf16.mxu1 %vm1984_vm0, %v1983_v0  ;;  %1719 = vmatpush3.bf16.msra.mxu1 %v1814_v16 }
0x1071   :  { %1720 = vmatprep.subr.bf16.mxu1 %v1983_v0 }
0x1074   :  { %1721 = vmatpush3.bf16.msra.mxu1 %v1816_v2 }
0x1075   :  { %1734 = vmatprep.subr.bf16.mxu1 %v1983_v0 }
0x112f   :  { %v634_v34 = vpop.f32.mrf.mxu1 }
0x1130   :  { %v641_v35 = vrot.slane %v634_v34, 2 }
0x1131   :  { %v1708_v36 = vpop.f32.mrf.mxu1 }
0x1132   :  { %v643_v37 = vadd.f32 %v641_v35, %v2083_v8 }
0x1133   :  { %v637_v38 = vpop.f32.mrf.mxu1 }
0x1134   :  { %1853 = vtanh.f32 %v643_v37  ;;  %v644_v41 = vmul.f32 0.5, %v643_v37 }
0x1135   :  { %v1709_v39 = vpop.f32.mrf.mxu1 }
0x1136   :  { %1855 = vtanh.f32 %v644_v41 }
0x1141   :  { %v1854_v40 = vpop.eup %1853 }
0x1142   :  { %654 = vrot.lane.b32.xlu0 %v1854_v40, %s1981_s17 }
0x1143   :  { %v1856_v42 = vpop.eup %1855 }
0x1144   :  { %v646_v43 = vmul.f32 0.5, %v1856_v42 }
0x1146   :  { %v647_v44 = vadd.f32 0.5, %v646_v43 }
0x1148   :  { %v652_v48 = vmul.f32 %v650_v47, %v647_v44 }
0x11b4   :  { %v655_v45 = vpop.permute.xlu0 %654 }
0x11b5   :  { %v657_v46 = vmul.f32 %v655_v45, %v647_v44 }
0x11b7   :  { %659 = vrot.lane.b32.xlu1 %v657_v46, %s1986_s3 }
0x1229   :  { %v660_v49 = vpop.permute.xlu1 %659 }
0x122a   :  { %v662_v50 = vadd.f32 %v660_v49, %v652_v48 }
0x122c   :  { %1857 = vtanh.f32 %v662_v50  ;;  %v727_v12 = vrot.slane %v662_v50, 7 }
0x1239   :  { %v1858_v51 = vpop.eup %1857 }
0x123a   :  { %665 = vrot.lane.b32.xlu0 %v1858_v51, %s1981_s17 }
0x12ac   :  { %v666_v52 = vpop.permute.xlu0 %665 }
0x12ad   :  { %v668_v53 = vmul.f32 %v666_v52, %v647_v44 }
0x12af   :  { %v669_v54 = vpack.c.bf16 %v668_v53, %v668_v53  ;;  %v757_v55 = vsel %vm756_vm8, %v755_v30, %v668_v53 }
0x12b1   :  { %v671_v56 = vrot.slane %v669_v54, 3 }
0x12b3   :  { %672 = vrot.lane.b32.xlu1 %v671_v56, %s1986_s3 }
0x1325   :  { %v673_v57 = vpop.permute.xlu1 %672 }
0x1326   :  { %1715 = vmatmul.mubr.msk.bf16.vlgmr.msra.gmra.mxu0 %vm136_vm2, %v673_v57 }
0x1327   :  { %1730 = vmatprep.mubr.msk.bf16.mxu0 %vm1984_vm0, %v1983_v0 }
0x13e6   :  { %v711_v58 = vpop.f32.mrf.mxu0 }
0x13e7   :  { %v718_v59 = vrot.slane %v711_v58, 1 }
0x13e8   :  { %v1716_v60 = vpop.f32.mrf.mxu0 }
0x13e9   :  { %v720_v61 = vadd.f32 %v718_v59, %v2083_v8  ;;  %v2178_v8 = vld [vmem:[%s2336_s5 + $0x8] sm:$0xff]  }
0x13ea   :  { %v714_v62 = vpop.f32.mrf.mxu0  ;;  %1727 = vmatpush3.bf16.msra.mxu0 %v2178_v8 }
0x13eb   :  { %1859 = vtanh.f32 %v720_v61  ;;  %v721_v3 = vmul.f32 0.5, %v720_v61  ;;  %1728 = vmatprep.subr.bf16.mxu0 %v1983_v0 }
0x13ec   :  { %v1717_v63 = vpop.f32.mrf.mxu0 }
0x13ed   :  { %1861 = vtanh.f32 %v721_v3 }
0x13ee   :  { %1729 = vmatpush3.bf16.msra.mxu0 %v2187_v17 }
0x13ef   :  { %1742 = vmatprep.subr.bf16.mxu0 %v1983_v0 }
0x13f1   :  { %1731 = vmatmul.mubr.bf16.vlgmr.msra.gmra.mxu0 %v1985_v5 }
0x13f2   :  { %1743 = vmatpush3.bf16.msra.mxu0 %v2178_v8  ;;  %1746 = vmatprep.mubr.msk.bf16.mxu0 %vm1984_vm0, %v1983_v0 }
0x13f3   :  { %1744 = vmatprep.subr.bf16.mxu0 %v1983_v0 }
0x13f6   :  { %1745 = vmatpush3.bf16.msra.mxu0 %v2187_v17 }
0x13f7   :  { %1758 = vmatprep.subr.bf16.mxu0 %v1983_v0 }
0x13f8   :  { %v1860_v1 = vpop.eup %1859 }
0x13f9   :  { %731 = vrot.lane.b32.xlu0 %v1860_v1, %s1981_s17 }
0x13fa   :  { %v1862_v6 = vpop.eup %1861 }
0x13fb   :  { %v723_v7 = vmul.f32 0.5, %v1862_v6 }
0x13fd   :  { %v724_v9 = vadd.f32 0.5, %v723_v7 }
0x13ff   :  { %v729_v13 = vmul.f32 %v727_v12, %v724_v9 }
0x146b   :  { %v732_v10 = vpop.permute.xlu0 %731 }
0x146c   :  { %v734_v11 = vmul.f32 %v732_v10, %v724_v9 }
0x146e   :  { %736 = vrot.lane.b32.xlu1 %v734_v11, %s1986_s3 }
0x14b1   :  { %v880_v5 = vpop.f32.mrf.mxu0 }
0x14b3   :  { %v1732_v22 = vpop.f32.mrf.mxu0 }
0x14b5   :  { %v883_v23 = vpop.f32.mrf.mxu0 }
0x14b7   :  { %v1733_v24 = vpop.f32.mrf.mxu0 }
0x14e0   :  { %v737_v14 = vpop.permute.xlu1 %736 }
0x14e1   :  { %v739_v15 = vadd.f32 %v737_v14, %v729_v13 }
0x14e3   :  { %1863 = vtanh.f32 %v739_v15 }
0x14f0   :  { %v1864_v18 = vpop.eup %1863 }
0x14f1   :  { %742 = vrot.lane.b32.xlu0 %v1864_v18, %s1981_s17 }
0x1563   :  { %v743_v19 = vpop.permute.xlu0 %742 }
0x1564   :  { %v745_v20 = vmul.f32 %v743_v19, %v724_v9 }
0x1566   :  { %v759_v21 = vsel %vm758_vm9, %v757_v55, %v745_v20 }
0x1567   :  { %v760_v4 = vpack.c.bf16 %v759_v21, %v759_v21 }
0x1569   :  { %773 = vrot.lane.b32.xlu1 %v760_v4, %s1986_s3 }
0x15db   :  { %v774_v25 = vpop.permute.xlu1 %773 }
0x15dc   :  { %1723 = vmatmul.mubr.msk.bf16.vlgmr.msra.gmra.mxu1 %vm136_vm2, %v774_v25 }
0x15dd   :  { %1735 = vmatpush3.bf16.msra.mxu1 %v2178_v8  ;;  %1738 = vmatprep.mubr.msk.bf16.mxu1 %vm1984_vm0, %v1983_v0 }
0x15de   :  { %1736 = vmatprep.subr.bf16.mxu1 %v1983_v0 }
0x15e1   :  { %1737 = vmatpush3.bf16.msra.mxu1 %v2187_v17 }
0x15e2   :  { %1750 = vmatprep.subr.bf16.mxu1 %v1983_v0 }
0x169c   :  { %v824_v27 = vpop.f32.mrf.mxu1 }
0x169d   :  { %v2217_v28 = vadd.f32 %v1575_v26, %v824_v27 }
0x169e   :  { %v1724_v29 = vpop.f32.mrf.mxu1 }
0x169f   :  { %v886_v30 = vadd.f32 %v880_v5, %v2217_v28 }
0x16a0   :  { %v827_v31 = vpop.f32.mrf.mxu1 }
0x16a1   :  { %1865 = vtanh.f32 %v886_v30  ;;  %v887_v34 = vmul.f32 0.5, %v886_v30 }
0x16a2   :  { %v1725_v32 = vpop.f32.mrf.mxu1 }
0x16a3   :  { %1867 = vtanh.f32 %v887_v34 }
0x16ae   :  { %v1866_v33 = vpop.eup %1865 }
0x16af   :  { %894 = vrot.lane.b32.xlu0 %v1866_v33, %s1981_s17 }
0x16b0   :  { %v1868_v35 = vpop.eup %1867 }
0x16b1   :  { %v889_v36 = vmul.f32 0.5, %v1868_v35 }
0x16b3   :  { %v890_v37 = vadd.f32 0.5, %v889_v36 }
0x16b5   :  { %v892_v40 = vmul.f32 0.0, %v890_v37 }
0x1721   :  { %v895_v38 = vpop.permute.xlu0 %894 }
0x1722   :  { %v897_v39 = vmul.f32 %v895_v38, %v890_v37 }
0x1724   :  { %899 = vrot.lane.b32.xlu1 %v897_v39, %s1986_s3 }
0x1796   :  { %v900_v41 = vpop.permute.xlu1 %899 }
0x1797   :  { %v902_v42 = vadd.f32 %v900_v41, %v892_v40 }
0x1799   :  { %1869 = vtanh.f32 %v902_v42  ;;  %v966_v61 = vrot.slane %v902_v42, 7 }
0x17a6   :  { %v1870_v43 = vpop.eup %1869 }
0x17a7   :  { %905 = vrot.lane.b32.xlu0 %v1870_v43, %s1981_s17 }
0x1819   :  { %v906_v44 = vpop.permute.xlu0 %905 }
0x181a   :  { %v2223_v45 = vmul.f32 %v906_v44, %v890_v37 }
0x181c   :  { %v909_v46 = vpack.c.bf16 %v2223_v45, %v2223_v45 }
0x181e   :  { %911 = vrot.lane.b32.xlu1 %v909_v46, %s1986_s3 }
0x1890   :  { %v912_v47 = vpop.permute.xlu1 %911 }
0x1891   :  { %1739 = vmatmul.mubr.msk.bf16.vlgmr.msra.gmra.mxu1 %vm136_vm2, %v912_v47 }
0x1892   :  { %1751 = vmatpush3.bf16.msra.mxu1 %v2178_v8  ;;  %1754 = vmatprep.mubr.msk.bf16.mxu1 %vm1984_vm0, %v1983_v0 }
0x1893   :  { %1752 = vmatprep.subr.bf16.mxu1 %v1983_v0 }
0x1896   :  { %1753 = vmatpush3.bf16.msra.mxu1 %v2187_v17 }
0x1897   :  { %1766 = vmatprep.subr.bf16.mxu1 %v1983_v0 }
0x1951   :  { %v950_v48 = vpop.f32.mrf.mxu1 }
0x1952   :  { %v957_v49 = vrot.slane %v950_v48, 7 }
0x1953   :  { %v1740_v50 = vpop.f32.mrf.mxu1 }
0x1954   :  { %v959_v51 = vadd.f32 %v957_v49, %v2217_v28 }
0x1955   :  { %v953_v52 = vpop.f32.mrf.mxu1 }
0x1956   :  { %1871 = vtanh.f32 %v959_v51  ;;  %v960_v55 = vmul.f32 0.5, %v959_v51 }
0x1957   :  { %v1741_v53 = vpop.f32.mrf.mxu1 }
0x1958   :  { %1873 = vtanh.f32 %v960_v55 }
0x1963   :  { %v1872_v54 = vpop.eup %1871 }
0x1964   :  { %970 = vrot.lane.b32.xlu0 %v1872_v54, %s1981_s17 }
0x1965   :  { %v1874_v56 = vpop.eup %1873 }
0x1966   :  { %v962_v57 = vmul.f32 0.5, %v1874_v56 }
0x1968   :  { %v963_v58 = vadd.f32 0.5, %v962_v57 }
0x196a   :  { %v968_v62 = vmul.f32 %v966_v61, %v963_v58 }
0x19d6   :  { %v971_v59 = vpop.permute.xlu0 %970 }
0x19d7   :  { %v973_v60 = vmul.f32 %v971_v59, %v963_v58 }
0x19d9   :  { %975 = vrot.lane.b32.xlu1 %v973_v60, %s1986_s3 }
0x1a4b   :  { %v976_v63 = vpop.permute.xlu1 %975 }
0x1a4c   :  { %v978_v1 = vadd.f32 %v976_v63, %v968_v62 }
0x1a4e   :  { %1875 = vtanh.f32 %v978_v1  ;;  %v1044_v23 = vrot.slane %v978_v1, 7 }
0x1a5b   :  { %v1876_v3 = vpop.eup %1875 }
0x1a5c   :  { %981 = vrot.lane.b32.xlu0 %v1876_v3, %s1981_s17 }
0x1ace   :  { %v982_v6 = vpop.permute.xlu0 %981 }
0x1acf   :  { %v984_v7 = vmul.f32 %v982_v6, %v963_v58 }
0x1ad1   :  { %v985_v9 = vpack.c.bf16 %v984_v7, %v984_v7  ;;  %v1452_v31 = vsel %vm746_vm3, %v2223_v45, %v984_v7 }
0x1ad3   :  { %v987_v10 = vshrl.u32 %v985_v9, 16 }
0x1ad5   :  { %989 = vrot.lane.b32.xlu1 %v987_v10, %s1986_s3 }
0x1b47   :  { %v990_v11 = vpop.permute.xlu1 %989 }
0x1b48   :  { %1747 = vmatmul.mubr.msk.bf16.vlgmr.msra.gmra.mxu0 %vm136_vm2, %v990_v11 }
0x1b49   :  { %1759 = vmatpush3.bf16.msra.mxu0 %v2178_v8  ;;  %1762 = vmatprep.mubr.msk.bf16.mxu0 %vm1984_vm0, %v1983_v0 }
0x1b4a   :  { %1760 = vmatprep.subr.bf16.mxu0 %v1983_v0 }
0x1b4d   :  { %1761 = vmatpush3.bf16.msra.mxu0 %v2187_v17 }
0x1b4e   :  { %1774 = vmatprep.subr.bf16.mxu0 %v1983_v0 }
0x1c08   :  { %v1028_v12 = vpop.f32.mrf.mxu0 }
0x1c09   :  { %v1035_v13 = vrot.slane %v1028_v12, 6 }
0x1c0a   :  { %v1748_v14 = vpop.f32.mrf.mxu0 }
0x1c0b   :  { %v1037_v15 = vadd.f32 %v1035_v13, %v2217_v28 }
0x1c0c   :  { %v1031_v16 = vpop.f32.mrf.mxu0 }
0x1c0d   :  { %1877 = vtanh.f32 %v1037_v15  ;;  %v1038_v19 = vmul.f32 0.5, %v1037_v15 }
0x1c0e   :  { %v1749_v2 = vpop.f32.mrf.mxu0 }
0x1c0f   :  { %1879 = vtanh.f32 %v1038_v19 }
0x1c1a   :  { %v1878_v18 = vpop.eup %1877 }
0x1c1b   :  { %1048 = vrot.lane.b32.xlu0 %v1878_v18, %s1981_s17 }
0x1c1c   :  { %v1880_v20 = vpop.eup %1879 }
0x1c1d   :  { %v1040_v21 = vmul.f32 0.5, %v1880_v20 }
0x1c1f   :  { %v1041_v4 = vadd.f32 0.5, %v1040_v21 }
0x1c21   :  { %v1046_v24 = vmul.f32 %v1044_v23, %v1041_v4 }
0x1c8d   :  { %v1049_v5 = vpop.permute.xlu0 %1048 }
0x1c8e   :  { %v1051_v22 = vmul.f32 %v1049_v5, %v1041_v4 }
0x1c90   :  { %1053 = vrot.lane.b32.xlu1 %v1051_v22, %s1986_s3 }
0x1d02   :  { %v1054_v25 = vpop.permute.xlu1 %1053 }
0x1d03   :  { %v1056_v26 = vadd.f32 %v1054_v25, %v1046_v24 }
0x1d05   :  { %1881 = vtanh.f32 %v1056_v26  ;;  %v1121_v49 = vrot.slane %v1056_v26, 7 }
0x1d12   :  { %v1882_v27 = vpop.eup %1881 }
0x1d13   :  { %1059 = vrot.lane.b32.xlu0 %v1882_v27, %s1981_s17 }
0x1d85   :  { %v1060_v29 = vpop.permute.xlu0 %1059 }
0x1d86   :  { %v1062_v30 = vmul.f32 %v1060_v29, %v1041_v4 }
0x1d88   :  { %v1063_v32 = vpack.c.bf16 %v1062_v30, %v1062_v30  ;;  %v1453_v33 = vsel %vm748_vm4, %v1452_v31, %v1062_v30 }
0x1d8a   :  { %v1065_v34 = vrot.slane %v1063_v32, 1 }
0x1d8c   :  { %1066 = vrot.lane.b32.xlu1 %v1065_v34, %s1986_s3 }
0x1dfe   :  { %v1067_v35 = vpop.permute.xlu1 %1066 }
0x1dff   :  { %1755 = vmatmul.mubr.msk.bf16.vlgmr.msra.gmra.mxu1 %vm136_vm2, %v1067_v35 }
0x1e00   :  { %1767 = vmatpush3.bf16.msra.mxu1 %v2178_v8  ;;  %1770 = vmatprep.mubr.msk.bf16.mxu1 %vm1984_vm0, %v1983_v0 }
0x1e01   :  { %1768 = vmatprep.subr.bf16.mxu1 %v1983_v0 }
0x1e04   :  { %1769 = vmatpush3.bf16.msra.mxu1 %v2187_v17 }
0x1e05   :  { %1782 = vmatprep.subr.bf16.mxu1 %v1983_v0 }
0x1ebf   :  { %v1105_v36 = vpop.f32.mrf.mxu1 }
0x1ec0   :  { %v1112_v37 = vrot.slane %v1105_v36, 5 }
0x1ec1   :  { %v1756_v38 = vpop.f32.mrf.mxu1 }
0x1ec2   :  { %v1114_v39 = vadd.f32 %v1112_v37, %v2217_v28 }
0x1ec3   :  { %v1108_v40 = vpop.f32.mrf.mxu1 }
0x1ec4   :  { %1883 = vtanh.f32 %v1114_v39  ;;  %v1115_v43 = vmul.f32 0.5, %v1114_v39 }
0x1ec5   :  { %v1757_v41 = vpop.f32.mrf.mxu1 }
0x1ec6   :  { %1885 = vtanh.f32 %v1115_v43 }
0x1ed1   :  { %v1884_v42 = vpop.eup %1883 }
0x1ed2   :  { %1125 = vrot.lane.b32.xlu0 %v1884_v42, %s1981_s17 }
0x1ed3   :  { %v1886_v44 = vpop.eup %1885 }
0x1ed4   :  { %v1117_v45 = vmul.f32 0.5, %v1886_v44 }
0x1ed6   :  { %v1118_v46 = vadd.f32 0.5, %v1117_v45 }
0x1ed8   :  { %v1123_v50 = vmul.f32 %v1121_v49, %v1118_v46 }
0x1f44   :  { %v1126_v47 = vpop.permute.xlu0 %1125 }
0x1f45   :  { %v1128_v48 = vmul.f32 %v1126_v47, %v1118_v46 }
0x1f47   :  { %1130 = vrot.lane.b32.xlu1 %v1128_v48, %s1986_s3 }
0x1fb9   :  { %v1131_v51 = vpop.permute.xlu1 %1130 }
0x1fba   :  { %v1133_v52 = vadd.f32 %v1131_v51, %v1123_v50 }
0x1fbc   :  { %1887 = vtanh.f32 %v1133_v52  ;;  %v1200_v15 = vrot.slane %v1133_v52, 7 }
0x1fc9   :  { %v1888_v53 = vpop.eup %1887 }
0x1fca   :  { %1136 = vrot.lane.b32.xlu0 %v1888_v53, %s1981_s17 }
0x203c   :  { %v1137_v54 = vpop.permute.xlu0 %1136 }
0x203d   :  { %v1139_v55 = vmul.f32 %v1137_v54, %v1118_v46 }
0x203f   :  { %v1140_v56 = vpack.c.bf16 %v1139_v55, %v1139_v55  ;;  %v1454_v57 = vsel %vm750_vm5, %v1453_v33, %v1139_v55 }
0x2041   :  { %v1142_v58 = vshrl.u32 %v1140_v56, 16 }
0x2043   :  { %v1144_v59 = vrot.slane %v1142_v58, 1 }
0x2045   :  { %1145 = vrot.lane.b32.xlu1 %v1144_v59, %s1986_s3 }
0x20b7   :  { %v1146_v60 = vpop.permute.xlu1 %1145 }
0x20b8   :  { %1763 = vmatmul.mubr.msk.bf16.vlgmr.msra.gmra.mxu0 %vm136_vm2, %v1146_v60 }
0x20b9   :  { %1775 = vmatpush3.bf16.msra.mxu0 %v2178_v8  ;;  %1778 = vmatprep.mubr.msk.bf16.mxu0 %vm1984_vm0, %v1983_v0 }
0x20ba   :  { %1776 = vmatprep.subr.bf16.mxu0 %v1983_v0 }
0x20bd   :  { %1777 = vmatpush3.bf16.msra.mxu0 %v2187_v17 }
0x20be   :  { %1790 = vmatprep.subr.mxu0 %v1983_v0 }
0x2178   :  { %v1184_v61 = vpop.f32.mrf.mxu0 }
0x2179   :  { %v1191_v62 = vrot.slane %v1184_v61, 4 }
0x217a   :  { %v1764_v63 = vpop.f32.mrf.mxu0 }
0x217b   :  { %v1193_v1 = vadd.f32 %v1191_v62, %v2217_v28 }
0x217c   :  { %v1187_v3 = vpop.f32.mrf.mxu0 }
0x217d   :  { %1889 = vtanh.f32 %v1193_v1  ;;  %v1194_v9 = vmul.f32 0.5, %v1193_v1 }
0x217e   :  { %v1765_v6 = vpop.f32.mrf.mxu0 }
0x217f   :  { %1891 = vtanh.f32 %v1194_v9 }
0x218a   :  { %v1890_v7 = vpop.eup %1889 }
0x218b   :  { %1204 = vrot.lane.b32.xlu0 %v1890_v7, %s1981_s17 }
0x218c   :  { %v1892_v10 = vpop.eup %1891 }
0x218d   :  { %v1196_v11 = vmul.f32 0.5, %v1892_v10 }
0x218f   :  { %v1197_v12 = vadd.f32 0.5, %v1196_v11 }
0x2191   :  { %v1202_v16 = vmul.f32 %v1200_v15, %v1197_v12 }
0x21fd   :  { %v1205_v13 = vpop.permute.xlu0 %1204 }
0x21fe   :  { %v1207_v14 = vmul.f32 %v1205_v13, %v1197_v12 }
0x2200   :  { %1209 = vrot.lane.b32.xlu1 %v1207_v14, %s1986_s3 }
0x2272   :  { %v1210_v2 = vpop.permute.xlu1 %1209 }
0x2273   :  { %v1212_v18 = vadd.f32 %v1210_v2, %v1202_v16 }
0x2275   :  { %1893 = vtanh.f32 %v1212_v18 }
0x2282   :  { %v1894_v19 = vpop.eup %1893 }
0x2283   :  { %1215 = vrot.lane.b32.xlu0 %v1894_v19, %s1981_s17 }
0x22f5   :  { %v1216_v20 = vpop.permute.xlu0 %1215 }
0x22f6   :  { %v1218_v21 = vmul.f32 %v1216_v20, %v1197_v12 }
0x22f8   :  { %v1219_v4 = vpack.c.bf16 %v1218_v21, %v1218_v21  ;;  %v1455_v5 = vsel %vm752_vm6, %v1454_v57, %v1218_v21 }
0x22fa   :  { %v1221_v22 = vrot.slane %v1219_v4, 2 }
0x22fc   :  { %1222 = vrot.lane.b32.xlu1 %v1221_v22, %s1986_s3 }
0x236e   :  { %v1223_v23 = vpop.permute.xlu1 %1222 }
0x236f   :  { %1771 = vmatmul.mubr.msk.bf16.vlgmr.msra.gmra.mxu1 %vm136_vm2, %v1223_v23 }
0x2370   :  { %1783 = vmatpush3.bf16.msra.mxu1 %v2178_v8  ;;  %1786 = vmatprep.mubr.msk.bf16.mxu1 %vm1984_vm0, %v1983_v0 }
0x2371   :  { %1784 = vmatprep.subr.bf16.mxu1 %v1983_v0 }
0x2374   :  { %1785 = vmatpush3.bf16.msra.mxu1 %v2187_v17  ;;  %v1277_v17 = vrot.slane %v1212_v18, 7 }
0x242f   :  { %v1261_v24 = vpop.f32.mrf.mxu1 }
0x2430   :  { %v1268_v25 = vrot.slane %v1261_v24, 3 }
0x2431   :  { %v1772_v26 = vpop.f32.mrf.mxu1 }
0x2432   :  { %v1270_v27 = vadd.f32 %v1268_v25, %v2217_v28 }
0x2433   :  { %v1264_v29 = vpop.f32.mrf.mxu1 }
0x2434   :  { %1895 = vtanh.f32 %v1270_v27  ;;  %v1271_v32 = vmul.f32 0.5, %v1270_v27  ;;  %v1461_v29 = vld [vmem:[%s2338_s7 + $0x10] sm:$0xff] }
0x2435   :  { %v1773_v30 = vpop.f32.mrf.mxu1 }
0x2436   :  { %1897 = vtanh.f32 %v1271_v32  ;;  %v1460_v30 = vld [vmem:[%s2338_s7 + $0x8] sm:$0xff] }
0x2441   :  { %v1896_v31 = vpop.eup %1895 }
0x2442   :  { %1281 = vrot.lane.b32.xlu0 %v1896_v31, %s1981_s17  ;;  %v1459_v31 = vld [vmem:[%s2338_s7] sm:$0xff] }
0x2443   :  { %v1898_v8 = vpop.eup %1897 }
0x2444   :  { %v1273_v33 = vmul.f32 0.5, %v1898_v8 }
0x2446   :  { %v1274_v34 = vadd.f32 0.5, %v1273_v33 }
0x2448   :  { %v1279_v37 = vmul.f32 %v1277_v17, %v1274_v34 }
0x24b4   :  { %v1282_v35 = vpop.permute.xlu0 %1281 }
0x24b5   :  { %v1284_v36 = vmul.f32 %v1282_v35, %v1274_v34 }
0x24b7   :  { %1286 = vrot.lane.b32.xlu1 %v1284_v36, %s1986_s3  ;;  %v1588_v36 = vld [vmem:[%s2339_s8] ss:$0 sm:$0xff] }
0x2529   :  { %v1287_v38 = vpop.permute.xlu1 %1286 }
0x252a   :  { %v1289_v39 = vadd.f32 %v1287_v38, %v1279_v37 }
0x252c   :  { %1899 = vtanh.f32 %v1289_v39  ;;  %v1356_v61 = vrot.slane %v1289_v39, 7 }
0x2539   :  { %v1900_v40 = vpop.eup %1899 }
0x253a   :  { %1292 = vrot.lane.b32.xlu0 %v1900_v40, %s1981_s17 }
0x25ac   :  { %v1293_v41 = vpop.permute.xlu0 %1292 }
0x25ad   :  { %v1295_v42 = vmul.f32 %v1293_v41, %v1274_v34 }
0x25af   :  { %v1296_v43 = vpack.c.bf16 %v1295_v42, %v1295_v42  ;;  %v1456_v44 = vsel %vm754_vm7, %v1455_v5, %v1295_v42 }
0x25b1   :  { %v1298_v45 = vshrl.u32 %v1296_v43, 16 }
0x25b3   :  { %v1300_v46 = vrot.slane %v1298_v45, 2 }
0x25b5   :  { %1301 = vrot.lane.b32.xlu1 %v1300_v46, %s1986_s3 }
0x2627   :  { %v1302_v47 = vpop.permute.xlu1 %1301 }
0x2628   :  { %1779 = vmatmul.mubr.msk.bf16.vlgmr.msra.gmra.mxu0 %vm136_vm2, %v1302_v47 }
0x2629   :  { %1798 = vmatprep.mubr.msk.f32.mxu0 %vm1984_vm0, %v1983_v0 }
0x26e8   :  { %v1340_v48 = vpop.f32.mrf.mxu0 }
0x26e9   :  { %v1347_v49 = vrot.slane %v1340_v48, 2 }
0x26ea   :  { %v1780_v50 = vpop.f32.mrf.mxu0 }
0x26eb   :  { %v1349_v51 = vadd.f32 %v1347_v49, %v2217_v28 }
0x26ec   :  { %v1343_v52 = vpop.f32.mrf.mxu0 }
0x26ed   :  { %1901 = vtanh.f32 %v1349_v51  ;;  %v1350_v55 = vmul.f32 0.5, %v1349_v51 }
0x26ee   :  { %v1781_v53 = vpop.f32.mrf.mxu0 }
0x26ef   :  { %1903 = vtanh.f32 %v1350_v55 }
0x26fa   :  { %v1902_v54 = vpop.eup %1901 }
0x26fb   :  { %1360 = vrot.lane.b32.xlu0 %v1902_v54, %s1981_s17 }
0x26fc   :  { %v1904_v56 = vpop.eup %1903 }
0x26fd   :  { %v1352_v57 = vmul.f32 0.5, %v1904_v56 }
0x26ff   :  { %v1353_v58 = vadd.f32 0.5, %v1352_v57 }
0x2701   :  { %v1358_v62 = vmul.f32 %v1356_v61, %v1353_v58 }
0x276d   :  { %v1361_v59 = vpop.permute.xlu0 %1360 }
0x276e   :  { %v1363_v60 = vmul.f32 %v1361_v59, %v1353_v58 }
0x2770   :  { %1365 = vrot.lane.b32.xlu1 %v1363_v60, %s1986_s3 }
0x27e2   :  { %v1366_v63 = vpop.permute.xlu1 %1365 }
0x27e3   :  { %v1368_v1 = vadd.f32 %v1366_v63, %v1358_v62 }
0x27e5   :  { %1905 = vtanh.f32 %v1368_v1  ;;  %v1433_v24 = vrot.slane %v1368_v1, 7 }
0x27f2   :  { %v1906_v3 = vpop.eup %1905 }
0x27f3   :  { %1371 = vrot.lane.b32.xlu0 %v1906_v3, %s1981_s17 }
0x2865   :  { %v1372_v6 = vpop.permute.xlu0 %1371 }
0x2866   :  { %v1374_v7 = vmul.f32 %v1372_v6, %v1353_v58 }
0x2868   :  { %v1375_v9 = vpack.c.bf16 %v1374_v7, %v1374_v7  ;;  %v1457_v10 = vsel %vm756_vm8, %v1456_v44, %v1374_v7 }
0x286a   :  { %v1377_v11 = vrot.slane %v1375_v9, 3 }
0x286c   :  { %1378 = vrot.lane.b32.xlu1 %v1377_v11, %s1986_s3 }
0x28de   :  { %v1379_v12 = vpop.permute.xlu1 %1378 }
0x28df   :  { %1787 = vmatmul.mubr.msk.bf16.vlgmr.msra.gmra.mxu1 %vm136_vm2, %v1379_v12 }
0x299f   :  { %v1417_v13 = vpop.f32.mrf.mxu1 }
0x29a0   :  { %v1424_v14 = vrot.slane %v1417_v13, 1 }
0x29a1   :  { %v1788_v15 = vpop.f32.mrf.mxu1 }
0x29a2   :  { %v1426_v16 = vadd.f32 %v1424_v14, %v2217_v28  ;;  %v1462_v28 = vld [vmem:[%s2338_s7 + $0x18] sm:$0xff]  ;;  %s1987_s7 = smov [#allocation7]  }
0x29a3   :  { %v1420_v2 = vpop.f32.mrf.mxu1  ;;  %1791 = vmatpush3.msra.mxu0 %v1462_v28  ;;  %s1553_s0 = sshll.u32 %s1987_s7, 4  ;;  %s1554_s0 = int_to_ptr.vmem [resolvable:$true] %s1553_s0 }
0x29a4   :  { %1907 = vtanh.f32 %v1426_v16  ;;  %v1427_v20 = vmul.f32 0.5, %v1426_v16  ;;  %1792 = vmatprep.subr.mxu0 %v1983_v0  ;;  %p1958_p11 = scmp.lt.s32.totalorder %s1554_s0, %s1554_s0 }
0x29a5   :  { %v1789_v18 = vpop.f32.mrf.mxu1  ;;  %1793 = vmatpush3.msra.mxu0 %v1461_v29 }
0x29a6   :  { %1909 = vtanh.f32 %v1427_v20  ;;  %1794 = vmatprep.subr.mxu0 %v1983_v0 }
0x29a7   :  { %1795 = vmatpush3.msra.mxu0 %v1460_v30 }
0x29a8   :  { %1796 = vmatprep.subr.mxu0 %v1983_v0 }
0x29a9   :  { %1797 = vmatpush3.msra.mxu0 %v1459_v31 }
0x29b1   :  { %v1908_v19 = vpop.eup %1907 }
0x29b2   :  { %1437 = vrot.lane.b32.xlu0 %v1908_v19, %s1981_s17 }
0x29b3   :  { %v1910_v21 = vpop.eup %1909 }
0x29b4   :  { %v1429_v4 = vmul.f32 0.5, %v1910_v21 }
0x29b6   :  { %v1430_v5 = vadd.f32 0.5, %v1429_v4 }
0x29b8   :  { %v1435_v25 = vmul.f32 %v1433_v24, %v1430_v5 }
0x2a24   :  { %v1438_v22 = vpop.permute.xlu0 %1437 }
0x2a25   :  { %v1440_v23 = vmul.f32 %v1438_v22, %v1430_v5 }
0x2a27   :  { %1442 = vrot.lane.b32.xlu1 %v1440_v23, %s1986_s3 }
0x2a99   :  { %v1443_v26 = vpop.permute.xlu1 %1442 }
0x2a9a   :  { %v1445_v27 = vadd.f32 %v1443_v26, %v1435_v25 }
0x2a9c   :  { %1911 = vtanh.f32 %v1445_v27 }
0x2aa9   :  { %v1912_v32 = vpop.eup %1911 }
0x2aaa   :  { %1448 = vrot.lane.b32.xlu0 %v1912_v32, %s1981_s17  ;;  %s1953_s17 = scalar_lea.vmem %s1554_s0, 128 }
0x2aab   :  { %p1954_p10 = scmp.ne.s32.totalorder %s1554_s0, %s1953_s17  ;;  %p1959_p12 = scmp.lt.s32.totalorder %s1953_s17, %s1953_s17 }
0x2aad   :  { %p1960_p13 = por %p1959_p12, %p1958_p11 }
0x2aaf   :  { %p1961_p0 = pnand %p1960_p13, %p1954_p10 }
0x2b1c   :  { %v1449_v8 = vpop.permute.xlu0 %1448 }
0x2b1d   :  { %v1451_v33 = vmul.f32 %v1449_v8, %v1430_v5 }
0x2b1f   :  { %v1458_v34 = vsel %vm758_vm9, %v1457_v10, %v1451_v33 }
0x2b20   :  { %1471 = vrot.lane.b32.xlu1 %v1458_v34, %s1986_s3 }
0x2b92   :  { %v1472_v35 = vpop.permute.xlu1 %1471 }
0x2b93   :  { %1799 = vmatmul.mubr.msk.f32.vlgmr.msra.gmra.mxu0 %vm136_vm2, %v1472_v35 }
0x2c53   :  { %v1541_v0 = vpop.f32.mrf.mxu0 }
0x2c54   :  { %v1542_v17 = vadd.f32 %v1588_v36, %v1541_v0 }
0x2c55   :  { %v1800_v37 = vpop.f32.mrf.mxu0 }
0x2c56   :  { %1546 = vst.msk [vmem:[#allocation7] sm:$0xff] %vm1545_vm10, %v1542_v17 }
0x2c57   :  { %1964 = shalt.err (!%p1961_p0)
}
0x2c58   :  { %1556 = dma.vmem_to_hbm [thread:$0]  %s1554_s0, 128, %s2340_s9, [#allocation4]  }
0x2c59   :  { %1977 = dma.done.wait [#allocation4], 128  }
0x2c5a   :  { %1978 = vsyncadd [#allocation4], 4294967168 }
0x2c5b   :  { %1560 = vsyncpa [#allocation3], 1 }
0x2c5c   :  { %1561 = vsyncpa [#allocation6], 1 }
0x2c5d   :  { %1562 = vsyncpa [#allocation4], 1 }

</bundles_post_ra>
